<compile_context>
chip_gen: v5e
topology: v5e:2x2
jax: 0.10.0
libtpu: 0.0.40
codegen_flags: <defaults>
</compile_context>

<pallas_src>
import functools
import math

import jax
import jax.numpy as jnp
from jax.experimental import pallas as pl
from jax.experimental.pallas import tpu as pltpu

EPS = 1e-12  # HF ViT layer_norm_eps


def _layer_norm(x, g, b, eps):
    # Statistics and normalization in f32 on all TPU generations.
    mu = jnp.mean(x, axis=-1, keepdims=True)
    xc = x - mu
    var = jnp.mean(xc * xc, axis=-1, keepdims=True)
    return xc * jax.lax.rsqrt(var + eps) * g + b


def _fused_vit_kernel(
    # initial hidden states, left in HBM (memory_space=pl.ANY)
    x0_hbm,
    # per-layer stacked params (block index follows the layer grid axis)
    ln1g_ref, ln1b_ref, wqkv_ref, bqkv_ref, wo_ref, bo_ref,
    ln2g_ref, ln2b_ref, w1_ref, b1_ref, w2_ref, b2_ref,
    # final layernorm (constant across the grid)
    lnfg_ref, lnfb_ref,
    # output (CLS rows only) + resident activation scratch + DMA semaphore
    out_ref, x_sc, dma_sem,
    *, batch_tile, seq, seq_pad, d_model, num_heads, eps,
):
    bt = pl.program_id(0)
    l = pl.program_id(1)
    last = pl.num_programs(1) - 1
    D = d_model
    hd = D // num_heads
    R = batch_tile * seq_pad          # rows of the 2-D activation view

    # ---- first layer step of each batch tile: pull x0 into VMEM -----------
    @pl.when(l == 0)
    def _load_x0():
        start = pl.multiple_of(bt * R, 8)
        cp = pltpu.make_async_copy(x0_hbm.at[pl.ds(start, R)], x_sc, dma_sem)
        cp.start()
        cp.wait()

    x = x_sc[...]                                               # (R, D) f32

    # ---- pre-norm multi-head self-attention --------------------------------
    xn = _layer_norm(x, ln1g_ref[0], ln1b_ref[0], eps)
    qkv = (
        jnp.dot(xn.astype(jnp.bfloat16), wqkv_ref[0],
                preferred_element_type=jnp.float32)
        + bqkv_ref[0]
    )                                                           # (R, 3D) f32
    qkv = qkv.astype(jnp.bfloat16)                              # cast once
    # 128-lane-aligned slices, then tile-aligned reshape (seq_pad % 8 == 0).
    q = qkv[:, :D].reshape(batch_tile, seq_pad, D)
    k = qkv[:, D:2 * D].reshape(batch_tile, seq_pad, D)
    v = qkv[:, 2 * D:].reshape(batch_tile, seq_pad, D)

    need_mask = seq < seq_pad
    if need_mask:
        key_valid = (
            jax.lax.broadcasted_iota(jnp.int32, (1, 1, seq_pad), 2) < seq)

    # Note: with head_dim = 32 the per-(batch, head) score contraction is
    # inherently K=32; we keep the statically unrolled per-head loop (proven
    # Mosaic lowering of the 3-D batched einsums) and recover the MXU win by
    # concatenating head contexts and doing ONE K=D output-projection dot.
    # The attention 1/sqrt(head_dim) scale is pre-folded into the Q weights.
    ctx_heads = []
    for h in range(num_heads):
        sl = slice(h * hd, (h + 1) * hd)
        s = jnp.einsum("bqd,bkd->bqk", q[:, :, sl], k[:, :, sl],
                       preferred_element_type=jnp.float32)
        if need_mask:
            s = jnp.where(key_valid, s, -1e30)                  # mask pad keys
        s = s - jnp.max(s, axis=-1, keepdims=True)
        p = jnp.exp(s)
        p = p * pl.reciprocal(jnp.sum(p, axis=-1, keepdims=True), approx=True)
        ctx_heads.append(
            jnp.einsum("bqk,bkd->bqd", p.astype(jnp.bfloat16), v[:, :, sl],
                       preferred_element_type=jnp.float32))     # (bt, S, hd)
    ctx = jnp.concatenate(ctx_heads, axis=-1).reshape(R, D)     # contiguous
    attn = jnp.dot(ctx.astype(jnp.bfloat16), wo_ref[0],
                   preferred_element_type=jnp.float32)          # one K=D dot
    x = x + attn + bo_ref[0]

    # ---- pre-norm MLP -------------------------------------------------------
    xn2 = _layer_norm(x, ln2g_ref[0], ln2b_ref[0], eps)
    h1 = (
        jnp.dot(xn2.astype(jnp.bfloat16), w1_ref[0],
                preferred_element_type=jnp.float32)
        + b1_ref[0]
    )
    # TODO(synk): HF ViT default activation is exact erf-GELU; tanh approx
    # used here (erf has no guaranteed Mosaic lowering).
    h1 = jax.nn.gelu(h1, approximate=True)
    h2 = (
        jnp.dot(h1.astype(jnp.bfloat16), w2_ref[0],
                preferred_element_type=jnp.float32)
        + b2_ref[0]
    )
    x = x + h2

    # Skip the redundant scratch writeback on the last layer step.
    @pl.when(l != last)
    def _store():
        x_sc[...] = x

    # ---- last layer step: final LayerNorm on CLS rows only -----------------
    @pl.when(l == last)
    def _finalize():
        cls = x.reshape(batch_tile, seq_pad, D)[:, 0, :]        # (bt, D)
        out_ref[0] = _layer_norm(cls, lnfg_ref[...], lnfb_ref[...], eps)


def vit_encoder_fused(x0_flat, params, *, batch, seq, seq_pad, num_heads,
                      batch_tile=None):
    """x0_flat: (batch * seq_pad, d_model) f32 initial hidden states.

    Returns (batch, d_model) f32: final-LayerNormed CLS token per image.
    """
    d_model = params["pos_embed"].shape[-1]
    num_layers = params["w_qkv"].shape[0]
    inter = params["w_fc1"].shape[-1]

    if batch_tile is None:
        # Aim for >= 128 activation rows per tile (fills the MXU M dim) while
        # still exposing a parallel batch-tile axis when batch is large.
        batch_tile = max(1, min(batch, max(1, 128 // seq_pad)))
        while batch % batch_tile:
            batch_tile -= 1
    assert batch % batch_tile == 0
    nbt = batch // batch_tile
    R = batch_tile * seq_pad

    layer3 = lambda bt, l: (l, 0, 0)
    const2 = lambda bt, l: (0, 0)

    in_specs = [
        pl.BlockSpec(memory_space=pl.ANY),                  # x0 stays in HBM
        pl.BlockSpec((1, 1, d_model), layer3),              # ln1_g
        pl.BlockSpec((1, 1, d_model), layer3),              # ln1_b
        pl.BlockSpec((1, d_model, 3 * d_model), layer3),    # w_qkv
        pl.BlockSpec((1, 1, 3 * d_model), layer3),          # b_qkv
        pl.BlockSpec((1, d_model, d_model), layer3),        # w_o
        pl.BlockSpec((1, 1, d_model), layer3),              # b_o
        pl.BlockSpec((1, 1, d_model), layer3),              # ln2_g
        pl.BlockSpec((1, 1, d_model), layer3),              # ln2_b
        pl.BlockSpec((1, d_model, inter), layer3),          # w_fc1
        pl.BlockSpec((1, 1, inter), layer3),                # b_fc1
        pl.BlockSpec((1, inter, d_model), layer3),          # w_fc2
        pl.BlockSpec((1, 1, d_model), layer3),              # b_fc2
        pl.BlockSpec((1, d_model), const2),                 # lnf_g
        pl.BlockSpec((1, d_model), const2),                 # lnf_b
    ]

    kernel = functools.partial(
        _fused_vit_kernel, batch_tile=batch_tile, seq=seq, seq_pad=seq_pad,
        d_model=d_model, num_heads=num_heads, eps=EPS)

    # VMEM budget derived from actual buffer sizes (double-buffered layer
    # weights + resident activations) instead of a hard-coded constant.
    # TODO(synk): on v7x (64 MiB VMEM) at ViT-Base scale, additionally split
    # w_fc1/w_fc2 along the inter dimension instead of raising this.
    layer_w_bytes = 2 * d_model * (3 * d_model + d_model + 2 * inter)  # bf16
    layer_b_bytes = 4 * (3 * d_model + inter + 6 * d_model)            # f32
    resident_bytes = R * d_model * 4 + 2 * batch_tile * d_model * 4
    vmem_limit = int(min(max(2 * (layer_w_bytes + layer_b_bytes)
                             + resident_bytes + (8 << 20), 32 << 20), 64 << 20))

    out = pl.pallas_call(
        kernel,
        grid=(nbt, num_layers),
        in_specs=in_specs,
        out_specs=pl.BlockSpec((1, batch_tile, d_model),
                               lambda bt, l: (bt, 0, 0)),
        out_shape=jax.ShapeDtypeStruct((nbt, batch_tile, d_model), jnp.float32),
        scratch_shapes=[
            pltpu.VMEM((R, d_model), jnp.float32),   # resident activations
            pltpu.SemaphoreType.DMA(()),             # x0 load semaphore
        ],
        compiler_params=pltpu.CompilerParams(
            dimension_semantics=("parallel", "arbitrary"),
            vmem_limit_bytes=vmem_limit,
        ),
    )(
        x0_flat,
        params["ln1_g"], params["ln1_b"], params["w_qkv"], params["b_qkv"],
        params["w_o"], params["b_o"], params["ln2_g"], params["ln2_b"],
        params["w_fc1"], params["b_fc1"], params["w_fc2"], params["b_fc2"],
        params["lnf_g"], params["lnf_b"],
    )
    return out.reshape(batch, d_model)


# ---------------------------------------------------------------------------
# Parameters (deterministic, synthetic) and forward pass
# ---------------------------------------------------------------------------
def init_params(key, *, channels, patch, hidden, inter, num_layers, seq,
                num_heads):
    std = 0.02
    kdim = channels * patch * patch
    hd = hidden // num_heads
    keys = iter(jax.random.split(key, 16))

    def nrm(shape, dtype=jnp.float32):
        return (std * jax.random.normal(next(keys), shape, jnp.float32)).astype(dtype)

    w_qkv = std * jax.random.normal(next(keys), (num_layers, hidden, 3 * hidden),
                                    jnp.float32)
    b_qkv = std * jax.random.normal(next(keys), (num_layers, 1, 3 * hidden),
                                    jnp.float32)
    # Fold the attention 1/sqrt(head_dim) scale into the Q projection so the
    # kernel never multiplies the (B, S, S) score tensor by it.  (When porting
    # real HF weights, apply the same fold to query.weight / query.bias.)
    qs = 1.0 / math.sqrt(hd)
    w_qkv = w_qkv.at[:, :, :hidden].multiply(qs)
    b_qkv = b_qkv.at[:, :, :hidden].multiply(qs)

    return {
        # Patch embedding (Conv2d with kernel=stride=P as a matmul) — applied
        # in the wrapper (plain XLA), NOT resident in the kernel grid.
        "patch_w": nrm((kdim, hidden)),
        "patch_b": nrm((1, hidden)),
        "cls_token": nrm((1, 1, hidden)),
        "pos_embed": nrm((1, seq, hidden)),
        # per-layer params stacked on a leading L axis (streamed per grid step)
        "ln1_g": jnp.ones((num_layers, 1, hidden), jnp.float32),
        "ln1_b": jnp.zeros((num_layers, 1, hidden), jnp.float32),
        "w_qkv": w_qkv.astype(jnp.bfloat16),
        "b_qkv": b_qkv,
        "w_o": nrm((num_layers, hidden, hidden), jnp.bfloat16),
        "b_o": nrm((num_layers, 1, hidden)),
        "ln2_g": jnp.ones((num_layers, 1, hidden), jnp.float32),
        "ln2_b": jnp.zeros((num_layers, 1, hidden), jnp.float32),
        "w_fc1": nrm((num_layers, hidden, inter), jnp.bfloat16),
        "b_fc1": nrm((num_layers, 1, inter)),
        "w_fc2": nrm((num_layers, inter, hidden), jnp.bfloat16),
        "b_fc2": nrm((num_layers, 1, hidden)),
        "lnf_g": jnp.ones((1, hidden), jnp.float32),
        "lnf_b": jnp.zeros((1, hidden), jnp.float32),
        "head_w": nrm((hidden, 1)),
        "head_b": jnp.zeros((1, 1), jnp.float32),
    }


def vit_regression_forward(pixel_values, params, *, patch, num_heads,
                           labels=None):
    B, C, H, W = pixel_values.shape
    Hn, Wn = H // patch, W // patch
    N = Hn * Wn
    D = params["pos_embed"].shape[-1]
    seq = params["pos_embed"].shape[1]
    seq_pad = ((seq + 7) // 8) * 8               # sublane-aligned token count

    # Patch extraction + projection + CLS + positional embedding: tiny plain
    # XLA ops in f32 (matches Conv2d(kernel=stride=P) with (C, ph, pw) order).
    patches = (
        pixel_values.reshape(B, C, Hn, patch, Wn, patch)
        .transpose(0, 2, 4, 1, 3, 5)
        .reshape(B * N, C * patch * patch)
    )
    emb = patches @ params["patch_w"] + params["patch_b"]       # (B*N, D) f32
    cls_tok = jnp.broadcast_to(params["cls_token"], (B, 1, D))
    x0 = jnp.concatenate([cls_tok, emb.reshape(B, N, D)], axis=1)
    x0 = x0 + params["pos_embed"]                               # (B, seq, D)
    # Zero-pad to seq_pad tokens; padded rows stay finite and are masked in
    # softmax inside the kernel, so they never influence real tokens.
    x0 = jnp.pad(x0, ((0, 0), (0, seq_pad - seq), (0, 0)))
    x0_flat = x0.reshape(B * seq_pad, D).astype(jnp.float32)

    cls_hidden = vit_encoder_fused(
        x0_flat, params, batch=B, seq=seq, seq_pad=seq_pad,
        num_heads=num_heads)                                    # (B, D)

    # Regression head on the CLS token (tiny D -> 1 matmul; plain JAX).
    values = cls_hidden @ params["head_w"] + params["head_b"]   # (B, 1)

    if labels is not None:
        loss = jnp.mean(jnp.square(values.reshape(-1) - labels.reshape(-1)))
        return loss, values
    return values


# ---------------------------------------------------------------------------
if __name__ == "__main__":
    # Small ViT: 16x16 image, 3 channels, patch 8 -> 4 patches + CLS = 5 tokens
    # (padded to 8 in the kernel).  hidden=128 keeps every block lane-dense.
    B, C, H, W = 2, 3, 16, 16
    PATCH, HIDDEN, INTER, HEADS, LAYERS = 8, 128, 256, 4, 2
    SEQ = (H // PATCH) * (W // PATCH) + 1

    key = jax.random.PRNGKey(0)
    k_px, k_lab, k_par = jax.random.split(key, 3)
    pixel_values = jax.random.normal(k_px, (B, C, H, W), jnp.float32)
    labels = jax.random.normal(k_lab, (B,), jnp.float32)
    params = init_params(k_par, channels=C, patch=PATCH, hidden=HIDDEN,
                         inter=INTER, num_layers=LAYERS, seq=SEQ,
                         num_heads=HEADS)

    fwd = jax.jit(functools.partial(vit_regression_forward,
                                    patch=PATCH, num_heads=HEADS))

    values = jax.block_until_ready(fwd(pixel_values, params))
    assert values.shape == (B, 1)
    assert bool(jnp.all(jnp.isfinite(values)))

    loss, values2 = fwd(pixel_values, params, labels=labels)
    loss = jax.block_until_ready(loss)
    assert loss.shape == () and values2.shape == (B, 1)

    print("KERNEL_OK")
</pallas_src>

<mosaic_0001>
module attributes {stable_mosaic.version = 11 : i64} {
  func.func @_fused_vit_kernel(%arg0: i32, %arg1: i32, %arg2: memref<16x128xf32, #tpu.memory_space<any>>, %arg3: memref<1x1x128xf32, #tpu.memory_space<vmem>>, %arg4: memref<1x1x128xf32, #tpu.memory_space<vmem>>, %arg5: memref<1x128x384xbf16, #tpu.memory_space<vmem>>, %arg6: memref<1x1x384xf32, #tpu.memory_space<vmem>>, %arg7: memref<1x128x128xbf16, #tpu.memory_space<vmem>>, %arg8: memref<1x1x128xf32, #tpu.memory_space<vmem>>, %arg9: memref<1x1x128xf32, #tpu.memory_space<vmem>>, %arg10: memref<1x1x128xf32, #tpu.memory_space<vmem>>, %arg11: memref<1x128x256xbf16, #tpu.memory_space<vmem>>, %arg12: memref<1x1x256xf32, #tpu.memory_space<vmem>>, %arg13: memref<1x256x128xbf16, #tpu.memory_space<vmem>>, %arg14: memref<1x1x128xf32, #tpu.memory_space<vmem>>, %arg15: memref<1x128xf32, #tpu.memory_space<vmem>>, %arg16: memref<1x128xf32, #tpu.memory_space<vmem>>, %arg17: memref<1x2x128xf32, #tpu.memory_space<vmem>>, %arg18: memref<16x128xf32, #tpu.memory_space<vmem>>, %arg19: memref<!tpu.dma_semaphore, #tpu.memory_space<semaphore_mem>>) attributes {dimension_semantics = [#tpu.dimension_semantics<parallel>, #tpu.dimension_semantics<arbitrary>], iteration_bounds = array<i64: 1, 2>, scalar_prefetch = 0 : i64, scratch_operands = 2 : i64, tpu.core_type = #tpu.core_type<tc>, window_params = [{}, {transform_indices = @transform_1, window_bounds = array<i64: 1, 1, 128>}, {transform_indices = @transform_2, window_bounds = array<i64: 1, 1, 128>}, {transform_indices = @transform_3, window_bounds = array<i64: 1, 128, 384>}, {transform_indices = @transform_4, window_bounds = array<i64: 1, 1, 384>}, {transform_indices = @transform_5, window_bounds = array<i64: 1, 128, 128>}, {transform_indices = @transform_6, window_bounds = array<i64: 1, 1, 128>}, {transform_indices = @transform_7, window_bounds = array<i64: 1, 1, 128>}, {transform_indices = @transform_8, window_bounds = array<i64: 1, 1, 128>}, {transform_indices = @transform_9, window_bounds = array<i64: 1, 128, 256>}, {transform_indices = @transform_10, window_bounds = array<i64: 1, 1, 256>}, {transform_indices = @transform_11, window_bounds = array<i64: 1, 256, 128>}, {transform_indices = @transform_12, window_bounds = array<i64: 1, 1, 128>}, {pipeline_mode = #tpu.pipeline_mode<synchronous>, transform_indices = @transform_13, window_bounds = array<i64: 1, 128>}, {pipeline_mode = #tpu.pipeline_mode<synchronous>, transform_indices = @transform_14, window_bounds = array<i64: 1, 128>}, {transform_indices = @transform_15, window_bounds = array<i64: 1, 2, 128>}]} {
    %c0_i32 = arith.constant 0 : i32
    %0 = arith.cmpi eq, %arg1, %c0_i32 : i32
    %1 = arith.extui %0 : i1 to i32
    %c0_i32_0 = arith.constant 0 : i32
    %2 = arith.cmpi ne, %1, %c0_i32_0 : i32
    scf.if %2 {
      %c16_i32 = arith.constant 16 : i32
      %197 = arith.muli %arg0, %c16_i32 : i32
      %198 = tpu.assume_multiple %197, 8 : i32
      %c0_i32_78 = arith.constant 0 : i32
      %199 = tpu.memref_slice %arg2[%198, %c0_i32_78] : memref<16x128xf32, #tpu.memory_space<any>> -> memref<16x128xf32, #tpu.memory_space<any>>
      tpu.enqueue_dma source(%199 : memref<16x128xf32, #tpu.memory_space<any>>) target(%arg18 : memref<16x128xf32, #tpu.memory_space<vmem>>) target_semaphore(%arg19 : memref<!tpu.dma_semaphore, #tpu.memory_space<semaphore_mem>>)
      %c0_i32_79 = arith.constant 0 : i32
      %200 = tpu.memref_slice %arg2[%198, %c0_i32_79] : memref<16x128xf32, #tpu.memory_space<any>> -> memref<16x128xf32, #tpu.memory_space<any>>
      tpu.wait_dma2 semaphore(%arg19 : memref<!tpu.dma_semaphore, #tpu.memory_space<semaphore_mem>>) src(%200 : memref<16x128xf32, #tpu.memory_space<any>>) dst(%arg18 : memref<16x128xf32, #tpu.memory_space<vmem>>)
    } else {
    }
    %c0 = arith.constant 0 : index
    %c0_1 = arith.constant 0 : index
    %3 = vector.load %arg18[%c0, %c0_1] : memref<16x128xf32, #tpu.memory_space<vmem>>, vector<16x128xf32>
    %c0_2 = arith.constant 0 : index
    %c0_3 = arith.constant 0 : index
    %c0_4 = arith.constant 0 : index
    %4 = vector.load %arg3[%c0_2, %c0_3, %c0_4] : memref<1x1x128xf32, #tpu.memory_space<vmem>>, vector<1x1x128xf32>
    %5 = vector.shape_cast %4 : vector<1x1x128xf32> to vector<1x128xf32>
    %c0_5 = arith.constant 0 : index
    %c0_6 = arith.constant 0 : index
    %c0_7 = arith.constant 0 : index
    %6 = vector.load %arg4[%c0_5, %c0_6, %c0_7] : memref<1x1x128xf32, #tpu.memory_space<vmem>>, vector<1x1x128xf32>
    %7 = vector.shape_cast %6 : vector<1x1x128xf32> to vector<1x128xf32>
    %cst = arith.constant dense<0.000000e+00> : vector<16xf32>
    %8 = vector.multi_reduction <add>, %3, %cst [1] : vector<16x128xf32> to vector<16xf32>
    %9 = vector.shape_cast %8 : vector<16xf32> to vector<16x1xf32>
    %cst_8 = arith.constant 1.280000e+02 : f32
    %10 = vector.broadcast %cst_8 : f32 to vector<16x1xf32>
    %11 = arith.divf %9, %10 : vector<16x1xf32>
    %12 = vector.broadcast %11 : vector<16x1xf32> to vector<16x128xf32>
    %13 = arith.subf %3, %12 : vector<16x128xf32>
    %14 = arith.mulf %13, %13 : vector<16x128xf32>
    %cst_9 = arith.constant dense<0.000000e+00> : vector<16xf32>
    %15 = vector.multi_reduction <add>, %14, %cst_9 [1] : vector<16x128xf32> to vector<16xf32>
    %16 = vector.shape_cast %15 : vector<16xf32> to vector<16x1xf32>
    %cst_10 = arith.constant 1.280000e+02 : f32
    %17 = vector.broadcast %cst_10 : f32 to vector<16x1xf32>
    %18 = arith.divf %16, %17 : vector<16x1xf32>
    %cst_11 = arith.constant 9.99999996E-13 : f32
    %19 = vector.broadcast %cst_11 : f32 to vector<16x1xf32>
    %20 = arith.addf %18, %19 : vector<16x1xf32>
    %21 = math.rsqrt %20 : vector<16x1xf32>
    %22 = vector.broadcast %21 : vector<16x1xf32> to vector<16x128xf32>
    %23 = arith.mulf %13, %22 : vector<16x128xf32>
    %24 = vector.broadcast %5 : vector<1x128xf32> to vector<16x128xf32>
    %25 = arith.mulf %23, %24 : vector<16x128xf32>
    %26 = vector.broadcast %7 : vector<1x128xf32> to vector<16x128xf32>
    %27 = arith.addf %25, %26 : vector<16x128xf32>
    %28 = arith.truncf %27 : vector<16x128xf32> to vector<16x128xbf16>
    %c0_12 = arith.constant 0 : index
    %c0_13 = arith.constant 0 : index
    %c0_14 = arith.constant 0 : index
    %29 = vector.load %arg5[%c0_12, %c0_13, %c0_14] : memref<1x128x384xbf16, #tpu.memory_space<vmem>>, vector<1x128x384xbf16>
    %30 = vector.shape_cast %29 : vector<1x128x384xbf16> to vector<128x384xbf16>
    %cst_15 = arith.constant dense<0.000000e+00> : vector<16x384xf32>
    %31 = tpu.matmul %28, %30, %cst_15 {dimension_numbers = #tpu.dot_dimension_numbers<[1], [0], [0], [1], [0, 0, 1, 1], [], []>} : vector<16x128xbf16>, vector<128x384xbf16>, vector<16x384xf32> -> vector<16x384xf32>
    %c0_16 = arith.constant 0 : index
    %c0_17 = arith.constant 0 : index
    %c0_18 = arith.constant 0 : index
    %32 = vector.load %arg6[%c0_16, %c0_17, %c0_18] : memref<1x1x384xf32, #tpu.memory_space<vmem>>, vector<1x1x384xf32>
    %33 = vector.shape_cast %32 : vector<1x1x384xf32> to vector<1x384xf32>
    %34 = vector.broadcast %33 : vector<1x384xf32> to vector<16x384xf32>
    %35 = arith.addf %31, %34 : vector<16x384xf32>
    %36 = arith.truncf %35 : vector<16x384xf32> to vector<16x384xbf16>
    %37 = vector.extract_strided_slice %36 {offsets = [0, 0], sizes = [16, 128], strides = [1, 1]} : vector<16x384xbf16> to vector<16x128xbf16>
    %38 = vector.shape_cast %37 : vector<16x128xbf16> to vector<2x8x128xbf16>
    %39 = vector.extract_strided_slice %36 {offsets = [0, 128], sizes = [16, 128], strides = [1, 1]} : vector<16x384xbf16> to vector<16x128xbf16>
    %40 = vector.shape_cast %39 : vector<16x128xbf16> to vector<2x8x128xbf16>
    %41 = vector.extract_strided_slice %36 {offsets = [0, 256], sizes = [16, 128], strides = [1, 1]} : vector<16x384xbf16> to vector<16x128xbf16>
    %42 = vector.shape_cast %41 : vector<16x128xbf16> to vector<2x8x128xbf16>
    %43 = tpu.iota {dimensions = array<i32: 2>} : vector<1x1x8xi32>
    %c5_i32 = arith.constant 5 : i32
    %44 = vector.broadcast %c5_i32 : i32 to vector<1x1x8xi32>
    %45 = arith.cmpi slt, %43, %44 : vector<1x1x8xi32>
    %46 = vector.extract_strided_slice %38 {offsets = [0, 0, 0], sizes = [2, 8, 32], strides = [1, 1, 1]} : vector<2x8x128xbf16> to vector<2x8x32xbf16>
    %47 = vector.extract_strided_slice %40 {offsets = [0, 0, 0], sizes = [2, 8, 32], strides = [1, 1, 1]} : vector<2x8x128xbf16> to vector<2x8x32xbf16>
    "tpu.trace_start"() <{level = 10 : i32, message = "bqd,bkd->bqk"}> : () -> ()
    %cst_19 = arith.constant dense<0.000000e+00> : vector<2x8x8xf32>
    %48 = tpu.matmul %46, %47, %cst_19 {dimension_numbers = #tpu.dot_dimension_numbers<[2], [2], [1], [1], [0, 0, 0, 1, 1, 1], [0], [0]>} : vector<2x8x32xbf16>, vector<2x8x32xbf16>, vector<2x8x8xf32> -> vector<2x8x8xf32>
    %cst_20 = arith.constant -1.000000e+30 : f32
    "tpu.trace_stop"() : () -> ()
    %49 = vector.shape_cast %45 : vector<1x1x8xi1> to vector<1x1x8xi1>
    %50 = vector.broadcast %49 : vector<1x1x8xi1> to vector<2x8x8xi1>
    %51 = vector.broadcast %cst_20 : f32 to vector<2x8x8xf32>
    %52 = arith.select %50, %48, %51 : vector<2x8x8xi1>, vector<2x8x8xf32>
    %cst_21 = arith.constant dense<0xFF800000> : vector<2x8xf32>
    %53 = vector.multi_reduction <maximumf>, %52, %cst_21 [2] : vector<2x8x8xf32> to vector<2x8xf32>
    %54 = vector.shape_cast %53 : vector<2x8xf32> to vector<2x8x1xf32>
    %55 = vector.broadcast %54 : vector<2x8x1xf32> to vector<2x8x8xf32>
    %56 = arith.subf %52, %55 : vector<2x8x8xf32>
    %57 = math.exp %56 : vector<2x8x8xf32>
    %cst_22 = arith.constant dense<0.000000e+00> : vector<2x8xf32>
    %58 = vector.multi_reduction <add>, %57, %cst_22 [2] : vector<2x8x8xf32> to vector<2x8xf32>
    %59 = vector.shape_cast %58 : vector<2x8xf32> to vector<2x8x1xf32>
    %60 = tpu.reciprocal %59 {approx = true} : vector<2x8x1xf32> -> vector<2x8x1xf32>
    %61 = vector.broadcast %60 : vector<2x8x1xf32> to vector<2x8x8xf32>
    %62 = arith.mulf %57, %61 : vector<2x8x8xf32>
    %63 = arith.truncf %62 : vector<2x8x8xf32> to vector<2x8x8xbf16>
    %64 = vector.extract_strided_slice %42 {offsets = [0, 0, 0], sizes = [2, 8, 32], strides = [1, 1, 1]} : vector<2x8x128xbf16> to vector<2x8x32xbf16>
    "tpu.trace_start"() <{level = 10 : i32, message = "bqk,bkd->bqd"}> : () -> ()
    %cst_23 = arith.constant dense<0.000000e+00> : vector<2x8x32xf32>
    %65 = tpu.matmul %63, %64, %cst_23 {dimension_numbers = #tpu.dot_dimension_numbers<[2], [1], [1], [2], [0, 0, 0, 1, 1, 2], [0], [0]>} : vector<2x8x8xbf16>, vector<2x8x32xbf16>, vector<2x8x32xf32> -> vector<2x8x32xf32>
    "tpu.trace_stop"() : () -> ()
    %66 = vector.extract_strided_slice %38 {offsets = [0, 0, 32], sizes = [2, 8, 32], strides = [1, 1, 1]} : vector<2x8x128xbf16> to vector<2x8x32xbf16>
    %67 = vector.extract_strided_slice %40 {offsets = [0, 0, 32], sizes = [2, 8, 32], strides = [1, 1, 1]} : vector<2x8x128xbf16> to vector<2x8x32xbf16>
    "tpu.trace_start"() <{level = 10 : i32, message = "bqd,bkd->bqk"}> : () -> ()
    %cst_24 = arith.constant dense<0.000000e+00> : vector<2x8x8xf32>
    %68 = tpu.matmul %66, %67, %cst_24 {dimension_numbers = #tpu.dot_dimension_numbers<[2], [2], [1], [1], [0, 0, 0, 1, 1, 1], [0], [0]>} : vector<2x8x32xbf16>, vector<2x8x32xbf16>, vector<2x8x8xf32> -> vector<2x8x8xf32>
    %cst_25 = arith.constant -1.000000e+30 : f32
    "tpu.trace_stop"() : () -> ()
    %69 = vector.shape_cast %45 : vector<1x1x8xi1> to vector<1x1x8xi1>
    %70 = vector.broadcast %69 : vector<1x1x8xi1> to vector<2x8x8xi1>
    %71 = vector.broadcast %cst_25 : f32 to vector<2x8x8xf32>
    %72 = arith.select %70, %68, %71 : vector<2x8x8xi1>, vector<2x8x8xf32>
    %cst_26 = arith.constant dense<0xFF800000> : vector<2x8xf32>
    %73 = vector.multi_reduction <maximumf>, %72, %cst_26 [2] : vector<2x8x8xf32> to vector<2x8xf32>
    %74 = vector.shape_cast %73 : vector<2x8xf32> to vector<2x8x1xf32>
    %75 = vector.broadcast %74 : vector<2x8x1xf32> to vector<2x8x8xf32>
    %76 = arith.subf %72, %75 : vector<2x8x8xf32>
    %77 = math.exp %76 : vector<2x8x8xf32>
    %cst_27 = arith.constant dense<0.000000e+00> : vector<2x8xf32>
    %78 = vector.multi_reduction <add>, %77, %cst_27 [2] : vector<2x8x8xf32> to vector<2x8xf32>
    %79 = vector.shape_cast %78 : vector<2x8xf32> to vector<2x8x1xf32>
    %80 = tpu.reciprocal %79 {approx = true} : vector<2x8x1xf32> -> vector<2x8x1xf32>
    %81 = vector.broadcast %80 : vector<2x8x1xf32> to vector<2x8x8xf32>
    %82 = arith.mulf %77, %81 : vector<2x8x8xf32>
    %83 = arith.truncf %82 : vector<2x8x8xf32> to vector<2x8x8xbf16>
    %84 = vector.extract_strided_slice %42 {offsets = [0, 0, 32], sizes = [2, 8, 32], strides = [1, 1, 1]} : vector<2x8x128xbf16> to vector<2x8x32xbf16>
    "tpu.trace_start"() <{level = 10 : i32, message = "bqk,bkd->bqd"}> : () -> ()
    %cst_28 = arith.constant dense<0.000000e+00> : vector<2x8x32xf32>
    %85 = tpu.matmul %83, %84, %cst_28 {dimension_numbers = #tpu.dot_dimension_numbers<[2], [1], [1], [2], [0, 0, 0, 1, 1, 2], [0], [0]>} : vector<2x8x8xbf16>, vector<2x8x32xbf16>, vector<2x8x32xf32> -> vector<2x8x32xf32>
    "tpu.trace_stop"() : () -> ()
    %86 = vector.extract_strided_slice %38 {offsets = [0, 0, 64], sizes = [2, 8, 32], strides = [1, 1, 1]} : vector<2x8x128xbf16> to vector<2x8x32xbf16>
    %87 = vector.extract_strided_slice %40 {offsets = [0, 0, 64], sizes = [2, 8, 32], strides = [1, 1, 1]} : vector<2x8x128xbf16> to vector<2x8x32xbf16>
    "tpu.trace_start"() <{level = 10 : i32, message = "bqd,bkd->bqk"}> : () -> ()
    %cst_29 = arith.constant dense<0.000000e+00> : vector<2x8x8xf32>
    %88 = tpu.matmul %86, %87, %cst_29 {dimension_numbers = #tpu.dot_dimension_numbers<[2], [2], [1], [1], [0, 0, 0, 1, 1, 1], [0], [0]>} : vector<2x8x32xbf16>, vector<2x8x32xbf16>, vector<2x8x8xf32> -> vector<2x8x8xf32>
    %cst_30 = arith.constant -1.000000e+30 : f32
    "tpu.trace_stop"() : () -> ()
    %89 = vector.shape_cast %45 : vector<1x1x8xi1> to vector<1x1x8xi1>
    %90 = vector.broadcast %89 : vector<1x1x8xi1> to vector<2x8x8xi1>
    %91 = vector.broadcast %cst_30 : f32 to vector<2x8x8xf32>
    %92 = arith.select %90, %88, %91 : vector<2x8x8xi1>, vector<2x8x8xf32>
    %cst_31 = arith.constant dense<0xFF800000> : vector<2x8xf32>
    %93 = vector.multi_reduction <maximumf>, %92, %cst_31 [2] : vector<2x8x8xf32> to vector<2x8xf32>
    %94 = vector.shape_cast %93 : vector<2x8xf32> to vector<2x8x1xf32>
    %95 = vector.broadcast %94 : vector<2x8x1xf32> to vector<2x8x8xf32>
    %96 = arith.subf %92, %95 : vector<2x8x8xf32>
    %97 = math.exp %96 : vector<2x8x8xf32>
    %cst_32 = arith.constant dense<0.000000e+00> : vector<2x8xf32>
    %98 = vector.multi_reduction <add>, %97, %cst_32 [2] : vector<2x8x8xf32> to vector<2x8xf32>
    %99 = vector.shape_cast %98 : vector<2x8xf32> to vector<2x8x1xf32>
    %100 = tpu.reciprocal %99 {approx = true} : vector<2x8x1xf32> -> vector<2x8x1xf32>
    %101 = vector.broadcast %100 : vector<2x8x1xf32> to vector<2x8x8xf32>
    %102 = arith.mulf %97, %101 : vector<2x8x8xf32>
    %103 = arith.truncf %102 : vector<2x8x8xf32> to vector<2x8x8xbf16>
    %104 = vector.extract_strided_slice %42 {offsets = [0, 0, 64], sizes = [2, 8, 32], strides = [1, 1, 1]} : vector<2x8x128xbf16> to vector<2x8x32xbf16>
    "tpu.trace_start"() <{level = 10 : i32, message = "bqk,bkd->bqd"}> : () -> ()
    %cst_33 = arith.constant dense<0.000000e+00> : vector<2x8x32xf32>
    %105 = tpu.matmul %103, %104, %cst_33 {dimension_numbers = #tpu.dot_dimension_numbers<[2], [1], [1], [2], [0, 0, 0, 1, 1, 2], [0], [0]>} : vector<2x8x8xbf16>, vector<2x8x32xbf16>, vector<2x8x32xf32> -> vector<2x8x32xf32>
    "tpu.trace_stop"() : () -> ()
    %106 = vector.extract_strided_slice %38 {offsets = [0, 0, 96], sizes = [2, 8, 32], strides = [1, 1, 1]} : vector<2x8x128xbf16> to vector<2x8x32xbf16>
    %107 = vector.extract_strided_slice %40 {offsets = [0, 0, 96], sizes = [2, 8, 32], strides = [1, 1, 1]} : vector<2x8x128xbf16> to vector<2x8x32xbf16>
    "tpu.trace_start"() <{level = 10 : i32, message = "bqd,bkd->bqk"}> : () -> ()
    %cst_34 = arith.constant dense<0.000000e+00> : vector<2x8x8xf32>
    %108 = tpu.matmul %106, %107, %cst_34 {dimension_numbers = #tpu.dot_dimension_numbers<[2], [2], [1], [1], [0, 0, 0, 1, 1, 1], [0], [0]>} : vector<2x8x32xbf16>, vector<2x8x32xbf16>, vector<2x8x8xf32> -> vector<2x8x8xf32>
    %cst_35 = arith.constant -1.000000e+30 : f32
    "tpu.trace_stop"() : () -> ()
    %109 = vector.shape_cast %45 : vector<1x1x8xi1> to vector<1x1x8xi1>
    %110 = vector.broadcast %109 : vector<1x1x8xi1> to vector<2x8x8xi1>
    %111 = vector.broadcast %cst_35 : f32 to vector<2x8x8xf32>
    %112 = arith.select %110, %108, %111 : vector<2x8x8xi1>, vector<2x8x8xf32>
    %cst_36 = arith.constant dense<0xFF800000> : vector<2x8xf32>
    %113 = vector.multi_reduction <maximumf>, %112, %cst_36 [2] : vector<2x8x8xf32> to vector<2x8xf32>
    %114 = vector.shape_cast %113 : vector<2x8xf32> to vector<2x8x1xf32>
    %115 = vector.broadcast %114 : vector<2x8x1xf32> to vector<2x8x8xf32>
    %116 = arith.subf %112, %115 : vector<2x8x8xf32>
    %117 = math.exp %116 : vector<2x8x8xf32>
    %cst_37 = arith.constant dense<0.000000e+00> : vector<2x8xf32>
    %118 = vector.multi_reduction <add>, %117, %cst_37 [2] : vector<2x8x8xf32> to vector<2x8xf32>
    %119 = vector.shape_cast %118 : vector<2x8xf32> to vector<2x8x1xf32>
    %120 = tpu.reciprocal %119 {approx = true} : vector<2x8x1xf32> -> vector<2x8x1xf32>
    %121 = vector.broadcast %120 : vector<2x8x1xf32> to vector<2x8x8xf32>
    %122 = arith.mulf %117, %121 : vector<2x8x8xf32>
    %123 = arith.truncf %122 : vector<2x8x8xf32> to vector<2x8x8xbf16>
    %124 = vector.extract_strided_slice %42 {offsets = [0, 0, 96], sizes = [2, 8, 32], strides = [1, 1, 1]} : vector<2x8x128xbf16> to vector<2x8x32xbf16>
    "tpu.trace_start"() <{level = 10 : i32, message = "bqk,bkd->bqd"}> : () -> ()
    %cst_38 = arith.constant dense<0.000000e+00> : vector<2x8x32xf32>
    %125 = tpu.matmul %123, %124, %cst_38 {dimension_numbers = #tpu.dot_dimension_numbers<[2], [1], [1], [2], [0, 0, 0, 1, 1, 2], [0], [0]>} : vector<2x8x8xbf16>, vector<2x8x32xbf16>, vector<2x8x32xf32> -> vector<2x8x32xf32>
    "tpu.trace_stop"() : () -> ()
    %126 = tpu.concatenate %65, %85, %105, %125 in 2 : vector<2x8x32xf32>, vector<2x8x32xf32>, vector<2x8x32xf32>, vector<2x8x32xf32> -> vector<2x8x128xf32>
    %127 = vector.shape_cast %126 : vector<2x8x128xf32> to vector<16x128xf32>
    %128 = arith.truncf %127 : vector<16x128xf32> to vector<16x128xbf16>
    %c0_39 = arith.constant 0 : index
    %c0_40 = arith.constant 0 : index
    %c0_41 = arith.constant 0 : index
    %129 = vector.load %arg7[%c0_39, %c0_40, %c0_41] : memref<1x128x128xbf16, #tpu.memory_space<vmem>>, vector<1x128x128xbf16>
    %130 = vector.shape_cast %129 : vector<1x128x128xbf16> to vector<128x128xbf16>
    %cst_42 = arith.constant dense<0.000000e+00> : vector<16x128xf32>
    %131 = tpu.matmul %128, %130, %cst_42 {dimension_numbers = #tpu.dot_dimension_numbers<[1], [0], [0], [1], [0, 0, 1, 1], [], []>} : vector<16x128xbf16>, vector<128x128xbf16>, vector<16x128xf32> -> vector<16x128xf32>
    %132 = arith.addf %3, %131 : vector<16x128xf32>
    %c0_43 = arith.constant 0 : index
    %c0_44 = arith.constant 0 : index
    %c0_45 = arith.constant 0 : index
    %133 = vector.load %arg8[%c0_43, %c0_44, %c0_45] : memref<1x1x128xf32, #tpu.memory_space<vmem>>, vector<1x1x128xf32>
    %134 = vector.shape_cast %133 : vector<1x1x128xf32> to vector<1x128xf32>
    %135 = vector.broadcast %134 : vector<1x128xf32> to vector<16x128xf32>
    %136 = arith.addf %132, %135 : vector<16x128xf32>
    %c0_46 = arith.constant 0 : index
    %c0_47 = arith.constant 0 : index
    %c0_48 = arith.constant 0 : index
    %137 = vector.load %arg9[%c0_46, %c0_47, %c0_48] : memref<1x1x128xf32, #tpu.memory_space<vmem>>, vector<1x1x128xf32>
    %138 = vector.shape_cast %137 : vector<1x1x128xf32> to vector<1x128xf32>
    %c0_49 = arith.constant 0 : index
    %c0_50 = arith.constant 0 : index
    %c0_51 = arith.constant 0 : index
    %139 = vector.load %arg10[%c0_49, %c0_50, %c0_51] : memref<1x1x128xf32, #tpu.memory_space<vmem>>, vector<1x1x128xf32>
    %140 = vector.shape_cast %139 : vector<1x1x128xf32> to vector<1x128xf32>
    %cst_52 = arith.constant dense<0.000000e+00> : vector<16xf32>
    %141 = vector.multi_reduction <add>, %136, %cst_52 [1] : vector<16x128xf32> to vector<16xf32>
    %142 = vector.shape_cast %141 : vector<16xf32> to vector<16x1xf32>
    %cst_53 = arith.constant 1.280000e+02 : f32
    %143 = vector.broadcast %cst_53 : f32 to vector<16x1xf32>
    %144 = arith.divf %142, %143 : vector<16x1xf32>
    %145 = vector.broadcast %144 : vector<16x1xf32> to vector<16x128xf32>
    %146 = arith.subf %136, %145 : vector<16x128xf32>
    %147 = arith.mulf %146, %146 : vector<16x128xf32>
    %cst_54 = arith.constant dense<0.000000e+00> : vector<16xf32>
    %148 = vector.multi_reduction <add>, %147, %cst_54 [1] : vector<16x128xf32> to vector<16xf32>
    %149 = vector.shape_cast %148 : vector<16xf32> to vector<16x1xf32>
    %cst_55 = arith.constant 1.280000e+02 : f32
    %150 = vector.broadcast %cst_55 : f32 to vector<16x1xf32>
    %151 = arith.divf %149, %150 : vector<16x1xf32>
    %cst_56 = arith.constant 9.99999996E-13 : f32
    %152 = vector.broadcast %cst_56 : f32 to vector<16x1xf32>
    %153 = arith.addf %151, %152 : vector<16x1xf32>
    %154 = math.rsqrt %153 : vector<16x1xf32>
    %155 = vector.broadcast %154 : vector<16x1xf32> to vector<16x128xf32>
    %156 = arith.mulf %146, %155 : vector<16x128xf32>
    %157 = vector.broadcast %138 : vector<1x128xf32> to vector<16x128xf32>
    %158 = arith.mulf %156, %157 : vector<16x128xf32>
    %159 = vector.broadcast %140 : vector<1x128xf32> to vector<16x128xf32>
    %160 = arith.addf %158, %159 : vector<16x128xf32>
    %161 = arith.truncf %160 : vector<16x128xf32> to vector<16x128xbf16>
    %c0_57 = arith.constant 0 : index
    %c0_58 = arith.constant 0 : index
    %c0_59 = arith.constant 0 : index
    %162 = vector.load %arg11[%c0_57, %c0_58, %c0_59] : memref<1x128x256xbf16, #tpu.memory_space<vmem>>, vector<1x128x256xbf16>
    %163 = vector.shape_cast %162 : vector<1x128x256xbf16> to vector<128x256xbf16>
    %cst_60 = arith.constant dense<0.000000e+00> : vector<16x256xf32>
    %164 = tpu.matmul %161, %163, %cst_60 {dimension_numbers = #tpu.dot_dimension_numbers<[1], [0], [0], [1], [0, 0, 1, 1], [], []>} : vector<16x128xbf16>, vector<128x256xbf16>, vector<16x256xf32> -> vector<16x256xf32>
    %c0_61 = arith.constant 0 : index
    %c0_62 = arith.constant 0 : index
    %c0_63 = arith.constant 0 : index
    %165 = vector.load %arg12[%c0_61, %c0_62, %c0_63] : memref<1x1x256xf32, #tpu.memory_space<vmem>>, vector<1x1x256xf32>
    %166 = vector.shape_cast %165 : vector<1x1x256xf32> to vector<1x256xf32>
    %167 = vector.broadcast %166 : vector<1x256xf32> to vector<16x256xf32>
    %168 = arith.addf %164, %167 : vector<16x256xf32>
    %169 = arith.mulf %168, %168 : vector<16x256xf32>
    %170 = arith.mulf %168, %169 : vector<16x256xf32>
    %cst_64 = arith.constant 4.471500e-02 : f32
    %171 = vector.broadcast %cst_64 : f32 to vector<16x256xf32>
    %172 = arith.mulf %171, %170 : vector<16x256xf32>
    %173 = arith.addf %168, %172 : vector<16x256xf32>
    %cst_65 = arith.constant 0.797884583 : f32
    %174 = vector.broadcast %cst_65 : f32 to vector<16x256xf32>
    %175 = arith.mulf %174, %173 : vector<16x256xf32>
    %176 = math.tanh %175 : vector<16x256xf32>
    %cst_66 = arith.constant 1.000000e+00 : f32
    %177 = vector.broadcast %cst_66 : f32 to vector<16x256xf32>
    %178 = arith.addf %177, %176 : vector<16x256xf32>
    %cst_67 = arith.constant 5.000000e-01 : f32
    %179 = vector.broadcast %cst_67 : f32 to vector<16x256xf32>
    %180 = arith.mulf %179, %178 : vector<16x256xf32>
    %181 = arith.mulf %168, %180 : vector<16x256xf32>
    %182 = arith.truncf %181 : vector<16x256xf32> to vector<16x256xbf16>
    %c0_68 = arith.constant 0 : index
    %c0_69 = arith.constant 0 : index
    %c0_70 = arith.constant 0 : index
    %183 = vector.load %arg13[%c0_68, %c0_69, %c0_70] : memref<1x256x128xbf16, #tpu.memory_space<vmem>>, vector<1x256x128xbf16>
    %184 = vector.shape_cast %183 : vector<1x256x128xbf16> to vector<256x128xbf16>
    %cst_71 = arith.constant dense<0.000000e+00> : vector<16x128xf32>
    %185 = tpu.matmul %182, %184, %cst_71 {dimension_numbers = #tpu.dot_dimension_numbers<[1], [0], [0], [1], [0, 0, 1, 1], [], []>} : vector<16x256xbf16>, vector<256x128xbf16>, vector<16x128xf32> -> vector<16x128xf32>
    %c0_72 = arith.constant 0 : index
    %c0_73 = arith.constant 0 : index
    %c0_74 = arith.constant 0 : index
    %186 = vector.load %arg14[%c0_72, %c0_73, %c0_74] : memref<1x1x128xf32, #tpu.memory_space<vmem>>, vector<1x1x128xf32>
    %187 = vector.shape_cast %186 : vector<1x1x128xf32> to vector<1x128xf32>
    %188 = vector.broadcast %187 : vector<1x128xf32> to vector<16x128xf32>
    %189 = arith.addf %185, %188 : vector<16x128xf32>
    %190 = arith.addf %136, %189 : vector<16x128xf32>
    %c1_i32 = arith.constant 1 : i32
    %191 = arith.cmpi ne, %arg1, %c1_i32 : i32
    %192 = arith.extui %191 : i1 to i32
    %c0_i32_75 = arith.constant 0 : i32
    %193 = arith.cmpi ne, %192, %c0_i32_75 : i32
    scf.if %193 {
      %c0_78 = arith.constant 0 : index
      %c0_79 = arith.constant 0 : index
      %197 = vector.load %arg18[%c0_78, %c0_79] : memref<16x128xf32, #tpu.memory_space<vmem>>, vector<16x128xf32>
      tpu.vector_store %arg18[%c0_78, %c0_79], %190 {strides = array<i32>} : memref<16x128xf32, #tpu.memory_space<vmem>>, vector<16x128xf32>,
    } else {
    }
    %c1_i32_76 = arith.constant 1 : i32
    %194 = arith.cmpi eq, %arg1, %c1_i32_76 : i32
    %195 = arith.extui %194 : i1 to i32
    %c0_i32_77 = arith.constant 0 : i32
    %196 = arith.cmpi ne, %195, %c0_i32_77 : i32
    scf.if %196 {
      %197 = vector.shape_cast %190 : vector<16x128xf32> to vector<2x8x128xf32>
      %198 = vector.extract_strided_slice %197 {offsets = [0, 0, 0], sizes = [2, 1, 128], strides = [1, 1, 1]} : vector<2x8x128xf32> to vector<2x1x128xf32>
      %199 = vector.shape_cast %198 : vector<2x1x128xf32> to vector<2x128xf32>
      %c0_78 = arith.constant 0 : index
      %c0_79 = arith.constant 0 : index
      %200 = vector.load %arg15[%c0_78, %c0_79] : memref<1x128xf32, #tpu.memory_space<vmem>>, vector<1x128xf32>
      %c0_80 = arith.constant 0 : index
      %c0_81 = arith.constant 0 : index
      %201 = vector.load %arg16[%c0_80, %c0_81] : memref<1x128xf32, #tpu.memory_space<vmem>>, vector<1x128xf32>
      %cst_82 = arith.constant dense<0.000000e+00> : vector<2xf32>
      %202 = vector.multi_reduction <add>, %199, %cst_82 [1] : vector<2x128xf32> to vector<2xf32>
      %203 = vector.shape_cast %202 : vector<2xf32> to vector<2x1xf32>
      %cst_83 = arith.constant 1.280000e+02 : f32
      %204 = vector.broadcast %cst_83 : f32 to vector<2x1xf32>
      %205 = arith.divf %203, %204 : vector<2x1xf32>
      %206 = vector.broadcast %205 : vector<2x1xf32> to vector<2x128xf32>
      %207 = arith.subf %199, %206 : vector<2x128xf32>
      %208 = arith.mulf %207, %207 : vector<2x128xf32>
      %cst_84 = arith.constant dense<0.000000e+00> : vector<2xf32>
      %209 = vector.multi_reduction <add>, %208, %cst_84 [1] : vector<2x128xf32> to vector<2xf32>
      %210 = vector.shape_cast %209 : vector<2xf32> to vector<2x1xf32>
      %cst_85 = arith.constant 1.280000e+02 : f32
      %211 = vector.broadcast %cst_85 : f32 to vector<2x1xf32>
      %212 = arith.divf %210, %211 : vector<2x1xf32>
      %cst_86 = arith.constant 9.99999996E-13 : f32
      %213 = vector.broadcast %cst_86 : f32 to vector<2x1xf32>
      %214 = arith.addf %212, %213 : vector<2x1xf32>
      %215 = math.rsqrt %214 : vector<2x1xf32>
      %216 = vector.broadcast %215 : vector<2x1xf32> to vector<2x128xf32>
      %217 = arith.mulf %207, %216 : vector<2x128xf32>
      %218 = vector.broadcast %200 : vector<1x128xf32> to vector<2x128xf32>
      %219 = arith.mulf %217, %218 : vector<2x128xf32>
      %220 = vector.broadcast %201 : vector<1x128xf32> to vector<2x128xf32>
      %221 = arith.addf %219, %220 : vector<2x128xf32>
      %c0_87 = arith.constant 0 : index
      %c0_88 = arith.constant 0 : index
      %c0_89 = arith.constant 0 : index
      %222 = vector.load %arg17[%c0_87, %c0_88, %c0_89] : memref<1x2x128xf32, #tpu.memory_space<vmem>>, vector<1x2x128xf32>
      %223 = vector.shape_cast %222 : vector<1x2x128xf32> to vector<2x128xf32>
      %224 = vector.shape_cast %221 : vector<2x128xf32> to vector<1x2x128xf32>
      tpu.vector_store %arg17[%c0_87, %c0_88, %c0_89], %224 {strides = array<i32>} : memref<1x2x128xf32, #tpu.memory_space<vmem>>, vector<1x2x128xf32>,
    } else {
    }
    return
  }
  func.func @transform_1(%arg0: i32, %arg1: i32) -> (i32, i32, i32) {
    %c0_i32 = arith.constant 0 : i32
    %c0_i32_0 = arith.constant 0 : i32
    %c0_i32_1 = arith.constant 0 : i32
    return %arg1, %c0_i32, %c0_i32_0 : i32, i32, i32
  }
  func.func @transform_2(%arg0: i32, %arg1: i32) -> (i32, i32, i32) {
    %c0_i32 = arith.constant 0 : i32
    %c0_i32_0 = arith.constant 0 : i32
    %c0_i32_1 = arith.constant 0 : i32
    return %arg1, %c0_i32, %c0_i32_0 : i32, i32, i32
  }
  func.func @transform_3(%arg0: i32, %arg1: i32) -> (i32, i32, i32) {
    %c0_i32 = arith.constant 0 : i32
    %c0_i32_0 = arith.constant 0 : i32
    %c0_i32_1 = arith.constant 0 : i32
    return %arg1, %c0_i32, %c0_i32_0 : i32, i32, i32
  }
  func.func @transform_4(%arg0: i32, %arg1: i32) -> (i32, i32, i32) {
    %c0_i32 = arith.constant 0 : i32
    %c0_i32_0 = arith.constant 0 : i32
    %c0_i32_1 = arith.constant 0 : i32
    return %arg1, %c0_i32, %c0_i32_0 : i32, i32, i32
  }
  func.func @transform_5(%arg0: i32, %arg1: i32) -> (i32, i32, i32) {
    %c0_i32 = arith.constant 0 : i32
    %c0_i32_0 = arith.constant 0 : i32
    %c0_i32_1 = arith.constant 0 : i32
    return %arg1, %c0_i32, %c0_i32_0 : i32, i32, i32
  }
  func.func @transform_6(%arg0: i32, %arg1: i32) -> (i32, i32, i32) {
    %c0_i32 = arith.constant 0 : i32
    %c0_i32_0 = arith.constant 0 : i32
    %c0_i32_1 = arith.constant 0 : i32
    return %arg1, %c0_i32, %c0_i32_0 : i32, i32, i32
  }
  func.func @transform_7(%arg0: i32, %arg1: i32) -> (i32, i32, i32) {
    %c0_i32 = arith.constant 0 : i32
    %c0_i32_0 = arith.constant 0 : i32
    %c0_i32_1 = arith.constant 0 : i32
    return %arg1, %c0_i32, %c0_i32_0 : i32, i32, i32
  }
  func.func @transform_8(%arg0: i32, %arg1: i32) -> (i32, i32, i32) {
    %c0_i32 = arith.constant 0 : i32
    %c0_i32_0 = arith.constant 0 : i32
    %c0_i32_1 = arith.constant 0 : i32
    return %arg1, %c0_i32, %c0_i32_0 : i32, i32, i32
  }
  func.func @transform_9(%arg0: i32, %arg1: i32) -> (i32, i32, i32) {
    %c0_i32 = arith.constant 0 : i32
    %c0_i32_0 = arith.constant 0 : i32
    %c0_i32_1 = arith.constant 0 : i32
    return %arg1, %c0_i32, %c0_i32_0 : i32, i32, i32
  }
  func.func @transform_10(%arg0: i32, %arg1: i32) -> (i32, i32, i32) {
    %c0_i32 = arith.constant 0 : i32
    %c0_i32_0 = arith.constant 0 : i32
    %c0_i32_1 = arith.constant 0 : i32
    return %arg1, %c0_i32, %c0_i32_0 : i32, i32, i32
  }
  func.func @transform_11(%arg0: i32, %arg1: i32) -> (i32, i32, i32) {
    %c0_i32 = arith.constant 0 : i32
    %c0_i32_0 = arith.constant 0 : i32
    %c0_i32_1 = arith.constant 0 : i32
    return %arg1, %c0_i32, %c0_i32_0 : i32, i32, i32
  }
  func.func @transform_12(%arg0: i32, %arg1: i32) -> (i32, i32, i32) {
    %c0_i32 = arith.constant 0 : i32
    %c0_i32_0 = arith.constant 0 : i32
    %c0_i32_1 = arith.constant 0 : i32
    return %arg1, %c0_i32, %c0_i32_0 : i32, i32, i32
  }
  func.func @transform_13(%arg0: i32, %arg1: i32) -> (i32, i32) {
    %c0_i32 = arith.constant 0 : i32
    %c0_i32_0 = arith.constant 0 : i32
    %c0_i32_1 = arith.constant 0 : i32
    return %c0_i32, %c0_i32_0 : i32, i32
  }
  func.func @transform_14(%arg0: i32, %arg1: i32) -> (i32, i32) {
    %c0_i32 = arith.constant 0 : i32
    %c0_i32_0 = arith.constant 0 : i32
    %c0_i32_1 = arith.constant 0 : i32
    return %c0_i32, %c0_i32_0 : i32, i32
  }
  func.func @transform_15(%arg0: i32, %arg1: i32) -> (i32, i32, i32) {
    %c0_i32 = arith.constant 0 : i32
    %c0_i32_0 = arith.constant 0 : i32
    %c0_i32_1 = arith.constant 0 : i32
    return %arg0, %c0_i32, %c0_i32_0 : i32, i32, i32
  }
}

</mosaic_0001>

<bundles_post_ra>
// kernel: vit_regression_forward.1
= control target key start
LH: loop header
LB: loop body
LE: loop exit
PB: predicated region body
PF: predicated region fallthrough
CT: control target
= control target key end

     0   :  { %s3464_s0 = inlined_call_operand.vmem [shape: f32[16,128], index: 0, kind: input, shape index: {}]   ;;  %s3465_s1 = inlined_call_operand.vmem [shape: f32[2,1,128], index: 1, kind: input, shape index: {}]   ;;  %s3466_s2 = inlined_call_operand.vmem [shape: f32[2,1,128], index: 2, kind: input, shape index: {}]   ;;  %s3467_s3 = inlined_call_operand.vmem [shape: bf16[2,128,384], index: 3, kind: input, shape index: {}]   ;;  %s3468_s4 = inlined_call_operand.vmem [shape: f32[2,1,384], index: 4, kind: input, shape index: {}]   ;;  %s3469_s5 = inlined_call_operand.hbm [shape: bf16[2,128,128], index: 5, kind: input, shape index: {}]   ;;  %s3470_s6 = inlined_call_operand.vmem [shape: f32[2,1,128], index: 6, kind: input, shape index: {}]   ;;  %s3471_s7 = inlined_call_operand.vmem [shape: f32[2,1,128], index: 7, kind: input, shape index: {}]   ;;  %s3472_s8 = inlined_call_operand.vmem [shape: f32[2,1,128], index: 8, kind: input, shape index: {}]   ;;  %s3473_s9 = inlined_call_operand.vmem [shape: bf16[2,128,256], index: 9, kind: input, shape index: {}]   ;;  %s3474_s10 = inlined_call_operand.vmem [shape: f32[2,1,256], index: 10, kind: input, shape index: {}]   ;;  %s3475_s11 = inlined_call_operand.hbm [shape: bf16[2,256,128], index: 11, kind: input, shape index: {}]   ;;  %s3476_s12 = inlined_call_operand.vmem [shape: f32[2,1,128], index: 12, kind: input, shape index: {}]   ;;  %s3477_s13 = inlined_call_operand.vmem [shape: f32[1,128], index: 13, kind: input, shape index: {}]   ;;  %s3478_s14 = inlined_call_operand.vmem [shape: f32[1,128], index: 14, kind: input, shape index: {}]   ;;  %s3479_s15 = inlined_call_operand.vmem [shape: f32[1,2,128], index: 15, kind: output, shape index: {}]  }
   0x1   :  { %3485 = sst [smem:[#allocation17_spill]] %s3464_s0 }
   0x2   :  { %3486 = sst [smem:[#allocation18_spill]] %s3469_s5 }
   0x3   :  { %3487 = sst [smem:[#allocation19_spill]] %s3475_s11 }
   0x4   :  { %3488 = sst [smem:[#allocation20_spill]] %s3476_s12 }
   0x5   :  { %3489 = sst [smem:[#allocation21_spill]] %s3477_s13 }
   0x6   :  { %3490 = sst [smem:[#allocation22_spill]] %s3478_s14 }
   0x7   :  { %3491 = sst [smem:[#allocation23_spill]] %s3479_s15 }
   0x8   :  { %20 = vsyncpa [#allocation5], 0 }
   0x9   :  { %22 = vsyncpa [#allocation5 + $0x1], 0 }
   0xa   :  { %23 = vsyncpa [#allocation7], 0 }
   0xb   :  { %25 = vsyncpa [#allocation7 + $0x1], 0  ;;  %s2968_s18 = smov 0   ;;  %s2970_s19 = smov 0  }
   0xc   :  { %s2972_s20 = smov 0   ;;  %s2974_s21 = smov 0  }
   0xd   :  { %s2976_s22 = smov 0   ;;  %s2978_s23 = smov 0  }
   0xe LB: > { %3492 = sst [smem:[#allocation12_spill]] %s2868_s20  ;;  %s2259_s24 = sadd.s32 4294967295, %s2880_s23   ;;  %s2880_s23 = sphi %s2978_s23, %s31_s23   ;;  %s2876_s22 = sphi %s2976_s22, %s3517_s22   ;;  %s2872_s21 = sphi %s2974_s21, %s3516_s21   ;;  %s2868_s20 = sphi %s2972_s20, %s3515_s20   ;;  %s2864_s19 = sphi %s2970_s19, %s3519_s19   ;;  %s2860_s18 = sphi %s2968_s18, %s3518_s18  }
   0xf   : > { %3493 = sst [smem:[#allocation13_spill]] %s2876_s22  ;;  %s40_s25 = sadd.s32 1, %s2876_s22 }
  0x10   : > { %3494 = sst [smem:[#allocation14_spill]] %s2880_s23  ;;  %p41_p0 = scmp.ge.s32.totalorder %s40_s25, 2 }
  0x11   : > { %s154_s26 = sadd.s32 1, %s2868_s20  ;;  %p161_p1 = scmp.ne.s32.totalorder %s2868_s20, %s2864_s19 }
  0x12   : > { %p162_p2 = scmp.eq.s32.totalorder %s2880_s23, 0  ;;  %s3521_s25 = smov (%p41_p0, %s40_s25), 0 }
  0x13   : > { %3495 = sst [smem:[#allocation15_spill]] %s3521_s25  ;;  %p167_p4 = scmp.ne.s32.totalorder %s2864_s19, %s2860_s18 }
  0x14   : > { %p3004_p3 = por %p162_p2, %p161_p1  ;;  %s151_s28 = ssub.s32 %s2876_s22, %s3521_s25 }
  0x15   : > { %p168_p5 = scmp.eq.s32.totalorder %s2259_s24, 0  ;;  %p152_p6 = scmp.eq.s32.totalorder %s151_s28, 0 }
  0x16   : > { %p2634_p8 = scmp.lt.s32.totalorder %s2880_s23, 2  ;;  %s3020_s16 = sand.u32 1, %s2868_s20  }
  0x17   : > { %p3011_p7 = por %p168_p5, %p167_p4  ;;  %s2554_s17 = sshll.u32 %s2876_s22, 6 }
  0x18   : > { %s3017_s30 = scalar_select %p152_p6, %s2868_s20, %s154_s26  }
  0x19   : > { %s2262_s18 = sshll.u32 %s3020_s16, 6  ;;  %s3499_s5 = sld [smem:[#allocation18_spill]] }
  0x1a   : > { %3498 = sst [smem:[#allocation16_spill]] %s3017_s30  ;;  %s478_s14 = scalar_lea.vmem [#allocation4], %s2262_s18 }
  0x1b   : > { %s486_s13 = sshll.u32 %s478_s14, 4  ;;  %p3029_p9 = pnand %p2634_p8, %p3004_p3  ;;  %s487_s13 = int_to_ptr.vmem [resolvable:$true] %s486_s13 }
  0x1c   : > { %p2268_p10 = scmp.ge.s32.totalorder %s2880_s23, 1  ;;  %p555_p11 = scmp.lt.s32.totalorder %s2880_s23, 3 }
  0x1d   : > { %s475_s30 = scalar_lea.sflag [#allocation5], %s3020_s16  ;;  %s2882_s20 = smov 64  }
  0x1e   : > { %s2883_s15 = smov 4   ;;  %p556_p12 = pnand %p2268_p10, %p555_p11 }
  0x1f   : > { %s483_s24 = scalar_lea.hbm %s3499_s5, %s2554_s17  ;;  %s2265_s25 = sshll.u32 %s3020_s16, 7 }
  0x20   : > { %s484_s28 = sshll.u32 %s483_s24, 4  ;;  %s2555_s14 = sshll.u32 %s2876_s22, 7  ;;  %s485_s28 = int_to_ptr.hbm [resolvable:$true] %s484_s28 }
  0x21   : > { %2630 = dma.hbm_to_vmem [thread:$0]  (!%p3029_p9), %s485_s28, 1024, %s487_s13, %s475_s30, %s2882_s20, %s2882_s20, %s2883_s15  }
  0x22   : > { %s3501_s11 = sld [smem:[#allocation19_spill]]  ;;  %s533_s5 = scalar_lea.vmem [#allocation6], %s2265_s25 }
  0x23   : > { %s541_s0 = sshll.u32 %s533_s5, 4  ;;  %s530_s12 = scalar_lea.sflag [#allocation7], %s3020_s16  ;;  %s542_s0 = int_to_ptr.vmem [resolvable:$true] %s541_s0 }
  0x24   : > { %s561_s23 = sand.u32 (!%p556_p12), 1, %s2864_s19  }
  0x25   : > { %s2269_s13 = sshll.u32 (!%p556_p12), %s561_s23, 6  ;;  %s562_s30 = scalar_lea.sflag (!%p556_p12), [#allocation5], %s561_s23 }
  0x26   : > { %559 = sbr.rel (%p556_p12) target bundleno = 2286 (0x8ee), region = 76  ;;  %s3047_s28 = scalar_lea.vmem (!%p556_p12), [#allocation4], %s2269_s13 }
  0x28   : > { %s538_s27 = scalar_lea.hbm %s3501_s11, %s2555_s14 }
  0x29   : > { %s539_s24 = sshll.u32 %s538_s27, 4  ;;  %s540_s24 = int_to_ptr.hbm [resolvable:$true] %s539_s24 }
  0x2a   : > { %2633 = dma.hbm_to_vmem [thread:$0]  (!%p3029_p9), %s540_s24, 2048, %s542_s0, %s530_s12, %s2882_s20, %s2882_s20, %s2883_s15  }
  0x2b   : > { %2849 = dma.done.wait (%p3011_p7), %s562_s30, 1024  }
  0x2c   : > { %2851 = vsyncadd (%p3011_p7), %s562_s30, 4294966272  ;;  %s2270_s5 = sshll.u32 %s561_s23, 7  ;;  %s572_s25 = scalar_lea.sflag [#allocation7], %s561_s23 }
  0x2d   : > { %s3053_s14 = scalar_lea.vmem [#allocation6], %s2270_s5 }
  0x2e   : > { %2853 = dma.done.wait (%p3011_p7), %s572_s25, 2048  }
  0x2f   : > { %2855 = vsyncadd (%p3011_p7), %s572_s25, 4294965248  ;;  %p661_p13 = scmp.lt.s32.totalorder %s2872_s21, 1  ;;  %s3502_s23 = sld [smem:[#allocation20_spill]] }
  0x30   : > { %p2275_p0 = scmp.ne.s32.totalorder %s2872_s21, 0 }
  0x31   : > { %s3061_s0 = scalar_select %p661_p13, %s2872_s21, 1 }
  0x32   : > { %s3503_s16 = sld [smem:[#allocation17_spill]] (!%p2275_p0) }
  0x33   : > { %s2621_s15 = smul.u32 192, %s3061_s0  ;;  %s2556_s17 = sshll.u32 %s3061_s0, 7 }
  0x34   : > { %s2622_s24 = smul.u32 3, %s3061_s0  ;;  %s3099_s13 = scalar_lea.vmem %s3473_s9, %s2556_s17 }
  0x35   : > { %s3084_s20 = scalar_lea.vmem %s3467_s3, %s2621_s15  ;;  %s2274_s30 = sshll.u32 %s3061_s0, 1 }
  0x36   : > { %s3093_s22 = scalar_lea.vmem %s3468_s4, %s2622_s24  ;;  %s3105_s15 = scalar_lea.vmem %s3474_s10, %s2274_s30 }
  0x37   : > { %s696_s29 = scalar_lea.vmem %s3502_s23, %s3061_s0  ;;  %705 = sbr.rel (%p2275_p0) target bundleno = 66 (0x42), region = 88 }
  0x3c   : > { %v718_v0 = vld [vmem:[%s3503_s16] sm:$0xff]  ;;  %v720_v1 = vld [vmem:[%s3503_s16 + $0x8] sm:$0xff] }
  0x3d   : > { %719 = vst [vmem:[#allocation2] sm:$0xff] %v718_v0 }
  0x3e   : > { %721 = vst [vmem:[#allocation2 + $0x8] sm:$0xff] %v720_v1 }
  0x3f   : > { %727 = vsyncadd [#allocation3], 256 }
  0x40   : > { %2856 = dma.done.wait [#allocation3], 256 }
  0x41   : > { %2857 = vsyncadd [#allocation3], 4294967040 }
  0x42 PF: > { %v2884_v4 = vmov 128.0   ;;  %v2362_v19 = vld [vmem:[%s3084_s20 + $0xa8] sm:$0xf]  ;;  %v2579_v20 = vld [vmem:[%s3084_s20 + $0xb0] sm:$0xf0]  ;;  %s3504_s18 = scalar_lea.vmem %s3465_s1, %s3061_s0  ;;  %s3505_s12 = scalar_lea.vmem %s3466_s2, %s3061_s0  ;;  %vm1014_vm7 = vcmask 261120  }
  0x43   : > { %2710 = vrcp.f32 %v2884_v4  ;;  %v2578_v21 = vld [vmem:[%s3084_s20 + $0xac] sm:$0xf]  ;;  %v2363_v22 = vor.u32 %v2579_v20, %v2362_v19  ;;  %v2364_v23 = vld [vmem:[%s3084_s20 + $0xb4] sm:$0xf0]  ;;  %v2370_v24 = vld [vmem:[%s3084_s20 + $0xb0] sm:$0xf]  ;;  %s3506_s24 = scalar_lea.vmem %s3470_s6, %s3061_s0  ;;  %s3507_s17 = scalar_lea.vmem %s3471_s7, %s3061_s0 }
  0x44   : > { %v3118_v2 = vld [vmem:[#allocation2] sm:$0xff]  ;;  %v2580_v25 = vld [vmem:[%s3084_s20 + $0xb8] sm:$0xf0]  ;;  %v2367_v26 = vor.u32 %v2578_v21, %v2364_v23  ;;  %v2350_v28 = vld [vmem:[%s3084_s20 + $0x90] sm:$0xf]  ;;  %vm1085_vm8 = vcmask 1043456  }
  0x45   : > { %735 = vadd.xlane.f32.xlu0 %v3118_v2  ;;  %v3121_v3 = vld [vmem:[#allocation2 + $0x8] sm:$0xff]  ;;  %v2371_v27 = vor.u32 %v2580_v25, %v2370_v24  ;;  %961 = vmatpush.bf16.msra.mxu0 %v2363_v22  ;;  %v2576_v29 = vld [vmem:[%s3084_s20 + $0x98] sm:$0xf0]  ;;  %v2575_v30 = vld [vmem:[%s3084_s20 + $0x94] sm:$0xf]  ;;  %s2886_s11 = smov 32  }
  0x46   : > { %975 = vmatpush.bf16.msra.mxu1 %v2367_v26  ;;  %v2351_v31 = vor.u32 %v2576_v29, %v2350_v28  ;;  %v2352_v32 = vld [vmem:[%s3084_s20 + $0x9c] sm:$0xf0]  ;;  %v2358_v33 = vld [vmem:[%s3084_s20 + $0x98] sm:$0xf]  ;;  %v2577_v34 = vld [vmem:[%s3084_s20 + $0xa0] sm:$0xf0] }
  0x47   : > { %989 = vmatpush.bf16.msra.mxu2 %v2371_v27  ;;  %v2355_v35 = vor.u32 %v2575_v30, %v2352_v32  ;;  %v2359_v36 = vor.u32 %v2577_v34, %v2358_v33  ;;  %v2338_v37 = vld [vmem:[%s3084_s20 + $0x78] sm:$0xf]  ;;  %v2573_v38 = vld [vmem:[%s3084_s20 + $0x80] sm:$0xf0]  ;;  %v2572_v39 = vld [vmem:[%s3084_s20 + $0x7c] sm:$0xf] }
  0x48   : > { %v2339_v40 = vor.u32 %v2573_v38, %v2338_v37  ;;  %v2340_v41 = vld [vmem:[%s3084_s20 + $0x84] sm:$0xf0]  ;;  %v2346_v42 = vld [vmem:[%s3084_s20 + $0x80] sm:$0xf]  ;;  %v2574_v43 = vld [vmem:[%s3084_s20 + $0x88] sm:$0xf0] }
  0x49   : > { %v2711_v5 = vpop.eup %2710  ;;  %962 = vmatpush.bf16.msra.mxu0 %v2351_v31  ;;  %v2343_v44 = vor.u32 %v2572_v39, %v2340_v41  ;;  %v2347_v45 = vor.u32 %v2574_v43, %v2346_v42  ;;  %v2326_v46 = vld [vmem:[%s3084_s20 + $0x60] sm:$0xf]  ;;  %v2570_v47 = vld [vmem:[%s3084_s20 + $0x68] sm:$0xf0]  ;;  %v2569_v48 = vld [vmem:[%s3084_s20 + $0x64] sm:$0xf] }
  0x4a   : > { %v740_v6 = vmul.f32 128.0, %v2711_v5  ;;  %vm744_vm0 = vweird.f32 %v2711_v5  ;;  %976 = vmatpush.bf16.msra.mxu1 %v2355_v35  ;;  %v2327_v49 = vor.u32 %v2570_v47, %v2326_v46  ;;  %v2328_v50 = vld [vmem:[%s3084_s20 + $0x6c] sm:$0xf0]  ;;  %v2334_v51 = vld [vmem:[%s3084_s20 + $0x68] sm:$0xf]  ;;  %s2887_s23 = smov 64  }
  0x4b   : > { %990 = vmatpush.bf16.msra.mxu2 %v2359_v36  ;;  %v2571_v52 = vld [vmem:[%s3084_s20 + $0x70] sm:$0xf0]  ;;  %v2331_v53 = vor.u32 %v2569_v48, %v2328_v50  ;;  %v2314_v55 = vld [vmem:[%s3084_s20 + $0x48] sm:$0xf]  ;;  %v2566_v57 = vld [vmem:[%s3084_s20 + $0x4c] sm:$0xf] }
  0x4c   : > { %v741_v7 = vsub.f32 1.0, %v740_v6  ;;  %v2335_v54 = vor.u32 %v2571_v52, %v2334_v51  ;;  %v2567_v56 = vld [vmem:[%s3084_s20 + $0x50] sm:$0xf0]  ;;  %v2316_v59 = vld [vmem:[%s3084_s20 + $0x54] sm:$0xf0]  ;;  %vm1057_vm10 = vcmask 64512  }
  0x4d   : > { %737 = vadd.xlane.f32.xlu0 %v3121_v3  ;;  %963 = vmatpush.bf16.msra.mxu0 %v2339_v40  ;;  %v2315_v58 = vor.u32 %v2567_v56, %v2314_v55  ;;  %v2322_v60 = vld [vmem:[%s3084_s20 + $0x50] sm:$0xf]  ;;  %v2568_v61 = vld [vmem:[%s3084_s20 + $0x58] sm:$0xf0]  ;;  %v2319_v62 = vor.u32 %v2566_v57, %v2316_v59  ;;  %v2563_v4 = vld [vmem:[%s3084_s20 + $0x34] sm:$0xf] }
  0x4e   : > { %v742_v8 = vmul.f32 %v2711_v5, %v741_v7  ;;  %977 = vmatpush.bf16.msra.mxu1 %v2343_v44  ;;  %v2323_v63 = vor.u32 %v2568_v61, %v2322_v60  ;;  %v2302_v0 = vld [vmem:[%s3084_s20 + $0x30] sm:$0xf]  ;;  %v2564_v1 = vld [vmem:[%s3084_s20 + $0x38] sm:$0xf0]  ;;  %v2304_v6 = vld [vmem:[%s3084_s20 + $0x3c] sm:$0xf0] }
  0x4f   : > { %991 = vmatpush.bf16.msra.mxu2 %v2347_v45  ;;  %v2310_v7 = vld [vmem:[%s3084_s20 + $0x38] sm:$0xf]  ;;  %v2298_v19 = vld [vmem:[%s3084_s20 + $0x20] sm:$0xf]  ;;  %v2562_v20 = vld [vmem:[%s3084_s20 + $0x28] sm:$0xf0] }
  0x50   : > { %v743_v9 = vadd.f32 %v2711_v5, %v742_v8  ;;  %v2565_v8 = vld [vmem:[%s3084_s20 + $0x40] sm:$0xf0]  ;;  %v2299_v22 = vor.u32 %v2562_v20, %v2298_v19  ;;  %v2278_v23 = vld [vmem:[%s3084_s20] sm:$0xf]  ;;  %v2558_v24 = vld [vmem:[%s3084_s20 + $0x8] sm:$0xf0] }
  0x51   : > { %964 = vmatpush.bf16.msra.mxu0 %v2327_v49  ;;  %v2557_v25 = vld [vmem:[%s3084_s20 + $0x4] sm:$0xf]  ;;  %v2279_v27 = vor.u32 %v2558_v24, %v2278_v23  ;;  %v2280_v28 = vld [vmem:[%s3084_s20 + $0xc] sm:$0xf0]  ;;  %v2286_v29 = vld [vmem:[%s3084_s20 + $0x8] sm:$0xf] }
  0x52   : > { %v3124_v10 = vsel %vm744_vm0, %v2711_v5, %v743_v9  ;;  %978 = vmatpush.bf16.msra.mxu1 %v2331_v53  ;;  %v2303_v5 = vor.u32 %v2564_v1, %v2302_v0  ;;  %v2307_v9 = vor.u32 %v2563_v4, %v2304_v6  ;;  %v2559_v30 = vld [vmem:[%s3084_s20 + $0x10] sm:$0xf0]  ;;  %v2283_v32 = vor.u32 %v2557_v25, %v2280_v28  ;;  %v2704_v51 = vld [vmem:[%s3504_s18] ss:$0 sm:$0xff]  ;;  %s3508_s18 = scalar_lea.vmem %s3472_s8, %s3061_s0  ;;  %p2548_p1 = scmp.eq.s32.totalorder %s2872_s21, 1 }
  0x53   : > { %992 = vmatpush.bf16.msra.mxu2 %v2335_v54  ;;  %v2287_v33 = vor.u32 %v2559_v30, %v2286_v29  ;;  %v2705_v56 = vld [vmem:[%s3505_s12] ss:$0 sm:$0xff]  ;;  %vm1503_vm11 = vcmask 523264   ;;  %vm1506_vm12 = vcmask 785408  }
  0x54   : > { %v825_v60 = vld [vmem:[%s3093_s22] sm:$0x7]  ;;  %s2885_s22 = smov 96  }
  0x55   : > { %965 = vmatpush.bf16.msra.mxu0 %v2315_v58  ;;  %v827_v61 = vperm.slane %v825_v60, 0 }
  0x56   : > { %979 = vmatpush.bf16.msra.mxu1 %v2319_v62  ;;  %v828_v62 = vperm.slane %v825_v60, 1 }
  0x57   : > { %993 = vmatpush.bf16.msra.mxu2 %v2323_v63 }
  0x59   : > { %966 = vmatpush.bf16.msra.mxu0 %v2303_v5  ;;  %v829_v5 = vperm.slane %v825_v60, 2 }
  0x5a   : > { %980 = vmatpush.bf16.msra.mxu1 %v2307_v9 }
  0xb8   : > { %v736_v11 = vpop.xlane.xlu0 %735 }
  0xb9   : > { %v746_v12 = vmul.f32 %v3124_v10, %v736_v11  ;;  %v2311_v11 = vor.u32 %v2565_v8, %v2310_v7 }
  0xbb   : > { %v3128_v13 = vsub.f32 %v3118_v2, %v746_v12  ;;  %994 = vmatpush.bf16.msra.mxu2 %v2311_v11  ;;  %v2290_v12 = vld [vmem:[%s3084_s20 + $0x18] sm:$0xf] }
  0xbd   : > { %v750_v14 = vmul.f32 %v3128_v13, %v3128_v13 }
  0xbf   : > { %752 = vadd.xlane.f32.xlu1 %v750_v14  ;;  %v2561_v14 = vld [vmem:[%s3084_s20 + $0x20] sm:$0xf0]  ;;  %995 = vmatpush.bf16.msra.mxu2 %v2299_v22 }
  0xc0   : > { %v738_v15 = vpop.xlane.xlu0 %737 }
  0xc1   : > { %v747_v16 = vmul.f32 %v3124_v10, %v738_v15  ;;  %v2560_v15 = vld [vmem:[%s3084_s20 + $0x1c] sm:$0xf] }
  0xc3   : > { %v3134_v17 = vsub.f32 %v3121_v3, %v747_v16  ;;  %v2291_v16 = vor.u32 %v2561_v14, %v2290_v12  ;;  %996 = vmatpush.bf16.msra.mxu2 %v2287_v33 }
  0xc5   : > { %v751_v18 = vmul.f32 %v3134_v17, %v3134_v17  ;;  %967 = vmatpush.bf16.msra.mxu0 %v2291_v16 }
  0xc7   : > { %754 = vadd.xlane.f32.xlu1 %v751_v18  ;;  %v2292_v18 = vld [vmem:[%s3084_s20 + $0x24] sm:$0xf0] }
  0xc8   : > { %v2295_v21 = vor.u32 %v2560_v15, %v2292_v18 }
  0xc9   : > { %968 = vmatpush.bf16.msra.mxu0 %v2279_v27 }
  0xca   : > { %981 = vmatpush.bf16.msra.mxu1 %v2295_v21 }
  0xce   : > { %982 = vmatpush.bf16.msra.mxu1 %v2283_v32 }
 0x132   : > { %v753_v26 = vpop.xlane.xlu1 %752 }
 0x133   : > { %v756_v31 = vmul.f32 %v753_v26, %v3124_v10 }
 0x135   : > { %v758_v34 = vadd.f32 1e-12, %v756_v31 }
 0x137   : > { %2712 = vrsqrt.f32 %v758_v34  ;;  %vm766_vm2 = vweird.f32 %v758_v34 }
 0x13a   : > { %v755_v35 = vpop.xlane.xlu1 %754 }
 0x13b   : > { %v757_v36 = vmul.f32 %v755_v35, %v3124_v10 }
 0x13d   : > { %v2713_v37 = vpop.eup %2712  ;;  %v759_v38 = vadd.f32 1e-12, %v757_v36 }
 0x13e   : > { %v761_v39 = vmul.f32 %v2713_v37, %v758_v34  ;;  %vm767_vm1 = vweird.f32 %v2713_v37 }
 0x13f   : > { %2714 = vrsqrt.f32 %v759_v38  ;;  %vm768_vm3 = vmor %vm766_vm2, %vm767_vm1  ;;  %vm776_vm5 = vweird.f32 %v759_v38 }
 0x140   : > { %v762_v40 = vmul.f32 %v2713_v37, %v761_v39 }
 0x142   : > { %v763_v41 = vmul.f32 0.5, %v762_v40 }
 0x144   : > { %v764_v42 = vsub.f32 1.5, %v763_v41 }
 0x145   : > { %v2715_v43 = vpop.eup %2714 }
 0x146   : > { %v765_v44 = vmul.f32 %v2713_v37, %v764_v42  ;;  %v771_v45 = vmul.f32 %v2715_v43, %v759_v38  ;;  %vm777_vm4 = vweird.f32 %v2715_v43 }
 0x147   : > { %vm778_vm6 = vmor %vm776_vm5, %vm777_vm4 }
 0x148   : > { %v772_v46 = vmul.f32 %v2715_v43, %v771_v45  ;;  %v769_v47 = vsel %vm768_vm3, %v2713_v37, %v765_v44  ;;  %v1011_v45 = vlaneseq }
 0x149   : > { %v780_v50 = vmul.f32 %v769_v47, %v3128_v13 }
 0x14a   : > { %v773_v48 = vmul.f32 0.5, %v772_v46  ;;  %v3231_v47 = vand.u32 127, %v1011_v45 }
 0x14b   : > { %v785_v55 = vmul.f32 %v2704_v51, %v780_v50 }
 0x14c   : > { %v774_v49 = vsub.f32 1.5, %v773_v48  ;;  %vm1013_vm9 = vcmp.lt.s32.totalorder %v3231_v47, 5 }
 0x14d   : > { %v790_v13 = vadd.f32 %v2705_v56, %v785_v55 }
 0x14e   : > { %v775_v52 = vmul.f32 %v2715_v43, %v774_v49 }
 0x150   : > { %v779_v53 = vsel %vm778_vm6, %v2715_v43, %v775_v52 }
 0x151   : > { %v781_v54 = vmul.f32 %v779_v53, %v3134_v17 }
 0x153   : > { %v786_v57 = vmul.f32 %v2704_v51, %v781_v54 }
 0x155   : > { %v791_v58 = vadd.f32 %v2705_v56, %v786_v57 }
 0x157   : > { %v792_v59 = vpack.c.bf16 %v791_v58, %v790_v13 }
 0x159   : > { %969 = vmatmul.bf16.vlgmr.msra.gmra.mxu0 %v792_v59  ;;  %983 = vmatmul.bf16.vlgmr.msra.gmra.mxu1 %v792_v59 }
 0x15a   : > { %997 = vmatmul.bf16.vlgmr.msra.gmra.mxu2 %v792_v59 }
 0x1d6   : > { %v970_v63 = vpop.f32.mrf.mxu0  ;;  %v984_v0 = vpop.f32.mrf.mxu1 }
 0x1d7   : > { %v971_v1 = vadd.f32 %v970_v63, %v827_v61  ;;  %v985_v17 = vadd.f32 %v984_v0, %v828_v62 }
 0x1d9   : > { %v1003_v4 = vpack.c.bf16 %v985_v17, %v971_v1 }
 0x1db   : > { %v1009_v6 = vrot.slane %v1003_v4, 4  ;;  %v1121_v23 = vunpack.c.l.b16 %v1003_v4 }
 0x1dd   : > { %v998_v7 = vpop.f32.mrf.mxu2  ;;  %v1019_v8 = vsel %vm1014_vm7, %v1009_v6, 0  ;;  %v1125_v9 = vunpack.c.l.b16 %v1009_v6  ;;  %v1122_v31 = vpack.c.b16 %v1121_v23, %v1121_v23 }
 0x1de   : > { %v999_v11 = vadd.f32 %v998_v7, %v829_v5  ;;  %v972_v12 = vpop.f32.mrf.mxu0  ;;  %v986_v14 = vpop.f32.mrf.mxu1  ;;  %1028 = vmatpush.bf16.xpose.msra.mxu3 %v1019_v8 }
 0x1df   : > { %v973_v15 = vadd.f32 %v972_v12, %v827_v61  ;;  %v987_v16 = vadd.f32 %v986_v14, %v828_v62  ;;  %v1126_v18 = vpack.c.b16 %v1125_v9, %v1125_v9 }
 0x1e0   : > { %v3203_v20 = vpack.c.bf16 %v999_v11, %v999_v11 }
 0x1e1   : > { %v1005_v19 = vpack.c.bf16 %v987_v16, %v973_v15  ;;  %1127 = vrot.lane.b32.xlu2 %v1126_v18, %s2885_s22 }
 0x1e2   : > { %v1087_v28 = vsel %vm1085_vm8, %v3203_v20, 0 }
 0x1e3   : > { %v1010_v21 = vrot.slane %v1005_v19, 4  ;;  %v1148_v22 = vunpack.c.l.b16 %v1005_v19 }
 0x1e5   : > { %v1000_v24 = vpop.f32.mrf.mxu2  ;;  %2372 = vmatmul.msk.bf16.vlgmr.msra.gmra.mxu3 %vm1014_vm7, %v1003_v4  ;;  %v1038_v25 = vsel %vm1014_vm7, %v1010_v21, 0  ;;  %v1149_v26 = vpack.c.b16 %v1148_v22, %v1148_v22  ;;  %v1152_v27 = vunpack.c.l.b16 %v1010_v21 }
 0x1e6   : > { %v1001_v29 = vadd.f32 %v1000_v24, %v829_v5  ;;  %1047 = vmatpush.bf16.xpose.msrb.mxu3 %v1038_v25  ;;  %v1202_v5 = vunpack.c.l.b16 %v3203_v20 }
 0x1e7   : > { %1150 = vrot.lane.b32.xlu1 %v1149_v26, %s2885_s22  ;;  %v1153_v30 = vpack.c.b16 %v1152_v27, %v1152_v27 }
 0x1e8   : > { %v3210_v32 = vpack.c.bf16 %v1001_v29, %v1001_v29  ;;  %v3253_v8 = vpack.c.b16 %v1202_v5, %v1202_v5 }
 0x1e9   : > { %1154 = vrot.lane.b32.xlu0 %v1153_v30, %s2885_s22  ;;  %1123 = vrot.lane.b32.xlu2 %v1122_v31, %s2885_s22 }
 0x1ea   : > { %v1106_v33 = vsel %vm1085_vm8, %v3210_v32, 0  ;;  %v1226_v29 = vunpack.c.l.b16 %v3210_v32 }
 0x1eb   : > { %1115 = vmatpush.bf16.msrb.mxu0 %v1106_v33 }
 0x1ee   : > { %1096 = vmatpush.bf16.msra.mxu3 %v1087_v28 }
 0x1ef   : > { %1388 = vrot.lane.b32.xlu1 %v1153_v30, %s2886_s11 }
 0x1f1   : > { %1272 = vrot.lane.b32.xlu0 %v1149_v26, %s2887_s23  ;;  %1251 = vrot.lane.b32.xlu2 %v1126_v18, %s2887_s23 }
 0x1f5   : > { %2373 = vmatmul.msk.bf16.vlgmr.msrb.gmra.mxu3 %vm1014_vm7, %v1005_v19 }
 0x1f9   : > { %1363 = vrot.lane.b32.xlu0 %v1122_v31, %s2886_s11  ;;  %1274 = vrot.lane.b32.xlu2 %v1153_v30, %s2887_s23 }
 0x201   : > { %1249 = vrot.lane.b32.xlu2 %v1122_v31, %s2887_s23  ;;  %v3266_v31 = vpack.c.b16 %v1226_v29, %v1226_v29 }
 0x209   : > { %1365 = vrot.lane.b32.xlu2 %v1126_v18, %s2886_s11 }
 0x211   : > { %1386 = vrot.lane.b32.xlu2 %v1149_v26, %s2886_s11 }
 0x23b   : > { %v1128_v34 = vpop.permute.xlu2 %1127 }
 0x23c   : > { %v1133_v35 = vsel %vm1014_vm7, %v1128_v34, 0 }
 0x23d   : > { %1142 = vmatpush.bf16.xpose.msrb.mxu2 %v1133_v35 }
 0x243   : > { %v1124_v36 = vpop.permute.xlu2 %1123 }
 0x244   : > { %2376 = vmatmul.msk.bf16.vlgmr.msrb.gmra.mxu2 %vm1014_vm7, %v1124_v36 }
 0x24b   : > { %v1252_v37 = vpop.permute.xlu2 %1251 }
 0x24c   : > { %v1257_v38 = vsel %vm1014_vm7, %v1252_v37, 0 }
 0x24d   : > { %1266 = vmatpush.bf16.xpose.msrb.mxu1 %v1257_v38 }
 0x253   : > { %v1275_v39 = vpop.permute.xlu2 %1274 }
 0x254   : > { %v1280_v44 = vsel %vm1014_vm7, %v1275_v39, 0 }
 0x259   : > { %v1151_v40 = vpop.permute.xlu1 %1150 }
 0x25b   : > { %v1155_v41 = vpop.permute.xlu0 %1154  ;;  %v1250_v42 = vpop.permute.xlu2 %1249 }
 0x25c   : > { %v1160_v43 = vsel %vm1014_vm7, %v1155_v41, 0  ;;  %2380 = vmatmul.msk.bf16.vlgmr.msrb.gmra.mxu1 %vm1014_vm7, %v1250_v42 }
 0x25d   : > { %1169 = vmatpush.bf16.xpose.msra.mxu2 %v1160_v43 }
 0x261   : > { %v1389_v46 = vpop.permute.xlu1 %1388 }
 0x262   : > { %v1394_v50 = vsel %vm1014_vm7, %v1389_v46, 0 }
 0x263   : > { %v1273_v48 = vpop.permute.xlu0 %1272  ;;  %v1366_v49 = vpop.permute.xlu2 %1365 }
 0x264   : > { %v1371_v51 = vsel %vm1014_vm7, %v1366_v49, 0  ;;  %2377 = vmatmul.msk.bf16.vlgmr.msra.gmra.mxu2 %vm1014_vm7, %v1151_v40 }
 0x265   : > { %1289 = vmatpush.bf16.xpose.msrb.mxu2 %v1280_v44  ;;  %1380 = vmatpush.bf16.xpose.msra.mxu1 %v1371_v51 }
 0x268   : > { %v1030_v52 = vpop.f32.mrf.mxu3 }
 0x269   : > { %v1055_v53 = vsel %vm1013_vm9, %v1030_v52, -1e+30 }
 0x26a   : > { %v1058_v54 = vsel %vm1057_vm10, %v1055_v53, -inf }
 0x26b   : > { %v1364_v55 = vpop.permute.xlu0 %1363  ;;  %1059 = vmax.xlane.f32.xlu1 %v1058_v54  ;;  %v1387_v60 = vpop.permute.xlu2 %1386 }
 0x26c   : > { %2384 = vmatmul.msk.bf16.vlgmr.msra.gmra.mxu1 %vm1014_vm7, %v1364_v55 }
 0x26d   : > { %1403 = vmatpush.bf16.xpose.msra.mxu2 %v1394_v50 }
 0x270   : > { %v1032_v56 = vpop.f32.mrf.mxu3 }
 0x274   : > { %2381 = vmatmul.msk.bf16.vlgmr.msrb.gmra.mxu2 %vm1014_vm7, %v1273_v48 }
 0x278   : > { %v1049_v57 = vpop.f32.mrf.mxu3 }
 0x279   : > { %v1056_v13 = vsel %vm1013_vm9, %v1049_v57, -1e+30 }
 0x27a   : > { %v1061_v58 = vsel %vm1057_vm10, %v1056_v13, -inf }
 0x27b   : > { %1062 = vmax.xlane.f32.xlu0 %v1061_v58 }
 0x280   : > { %v1051_v59 = vpop.f32.mrf.mxu3 }
 0x284   : > { %2385 = vmatmul.msk.bf16.vlgmr.msra.gmra.mxu2 %vm1014_vm7, %v1387_v60 }
 0x2c7   : > { %v1144_v61 = vpop.f32.mrf.mxu2 }
 0x2c8   : > { %v1175_v62 = vsel %vm1013_vm9, %v1144_v61, -1e+30 }
 0x2c9   : > { %v1177_v63 = vsel %vm1057_vm10, %v1175_v62, -inf }
 0x2ca   : > { %1178 = vmax.xlane.f32.xlu2 %v1177_v63 }
 0x2cf   : > { %v1146_v0 = vpop.f32.mrf.mxu2 }
 0x2d9   : > { %v1268_v1 = vpop.f32.mrf.mxu1 }
 0x2da   : > { %v1295_v17 = vsel %vm1013_vm9, %v1268_v1, -1e+30 }
 0x2db   : > { %v1297_v4 = vsel %vm1057_vm10, %v1295_v17, -inf }
 0x2dc   : > { %1298 = vmax.xlane.f32.xlu0 %v1297_v4 }
 0x2de   : > { %v1060_v6 = vpop.xlane.xlu1 %1059 }
 0x2df   : > { %v1064_v7 = vsub.f32 %v1055_v53, %v1060_v6 }
 0x2e1   : > { %v1066_v9 = vmul.f32 1.442695, %v1064_v7  ;;  %v1270_v11 = vpop.f32.mrf.mxu1 }
 0x2e2   : > { %1321 = vrot.lane.b32.xlu2 %v3253_v8, %s2887_s23 }
 0x2e3   : > { %2716 = vpow2.f32 %v1066_v9 }
 0x2e7   : > { %v1171_v12 = vpop.f32.mrf.mxu2 }
 0x2e8   : > { %v1176_v14 = vsel %vm1013_vm9, %v1171_v12, -1e+30 }
 0x2e9   : > { %v2717_v15 = vpop.eup %2716  ;;  %v1382_v16 = vpop.f32.mrf.mxu1  ;;  %v1180_v18 = vsel %vm1057_vm10, %v1176_v14, -inf }
 0x2ea   : > { %1181 = vmax.xlane.f32.xlu1 %v1180_v18  ;;  %v1070_v19 = vsel %vm1057_vm10, %v2717_v15, 0.0  ;;  %v1409_v20 = vsel %vm1013_vm9, %v1382_v16, -1e+30 }
 0x2eb   : > { %1071 = vadd.xlane.f32.xlu0 %v1070_v19  ;;  %v1411_v26 = vsel %vm1057_vm10, %v1409_v20, -inf }
 0x2ee   : > { %v1063_v21 = vpop.xlane.xlu0 %1062 }
 0x2ef   : > { %v1065_v22 = vsub.f32 %v1056_v13, %v1063_v21  ;;  %v1173_v23 = vpop.f32.mrf.mxu2 }
 0x2f1   : > { %v1068_v24 = vmul.f32 1.442695, %v1065_v22  ;;  %v1384_v25 = vpop.f32.mrf.mxu1 }
 0x2f2   : > { %1412 = vmax.xlane.f32.xlu1 %v1411_v26 }
 0x2f3   : > { %2718 = vpow2.f32 %v1068_v24 }
 0x2f7   : > { %v1291_v27 = vpop.f32.mrf.mxu2 }
 0x2f8   : > { %v1296_v34 = vsel %vm1013_vm9, %v1291_v27, -1e+30 }
 0x2f9   : > { %v2719_v28 = vpop.eup %2718  ;;  %v1300_v36 = vsel %vm1057_vm10, %v1296_v34, -inf }
 0x2fa   : > { %v1073_v30 = vsel %vm1057_vm10, %v2719_v28, 0.0 }
 0x2fb   : > { %1074 = vadd.xlane.f32.xlu1 %v1073_v30 }
 0x2ff   : > { %v1293_v33 = vpop.f32.mrf.mxu2  ;;  %1228 = vrot.lane.b32.xlu0 %v3266_v31, %s2885_s22 }
 0x307   : > { %v1405_v35 = vpop.f32.mrf.mxu2 }
 0x308   : > { %v1410_v37 = vsel %vm1013_vm9, %v1405_v35, -1e+30 }
 0x309   : > { %v1414_v38 = vsel %vm1057_vm10, %v1410_v37, -inf }
 0x30b   : > { %1301 = vmax.xlane.f32.xlu2 %v1300_v36 }
 0x30f   : > { %v1407_v32 = vpop.f32.mrf.mxu2 }
 0x313   : > { %1415 = vmax.xlane.f32.xlu2 %v1414_v38 }
 0x314   : > { %1204 = vrot.lane.b32.xlu1 %v3253_v8, %s2885_s22 }
 0x33d   : > { %v1179_v39 = vpop.xlane.xlu2 %1178 }
 0x33e   : > { %v1183_v40 = vsub.f32 %v1175_v62, %v1179_v39 }
 0x340   : > { %v1185_v41 = vmul.f32 1.442695, %v1183_v40 }
 0x342   : > { %2720 = vpow2.f32 %v1185_v41 }
 0x348   : > { %v3278_v42 = vpop.eup %2720 }
 0x349   : > { %v1189_v43 = vsel %vm1057_vm10, %v3278_v42, 0.0 }
 0x34a   : > { %1190 = vadd.xlane.f32.xlu0 %v1189_v43 }
 0x34f   : > { %v1299_v44 = vpop.xlane.xlu0 %1298 }
 0x350   : > { %v1303_v45 = vsub.f32 %v1295_v17, %v1299_v44  ;;  %v1322_v17 = vpop.permute.xlu2 %1321 }
 0x351   : > { %v1327_v16 = vsel %vm1085_vm8, %v1322_v17, 0 }
 0x352   : > { %v1305_v46 = vmul.f32 1.442695, %v1303_v45 }
 0x354   : > { %2722 = vpow2.f32 %v1305_v46 }
 0x35a   : > { %v3282_v47 = vpop.eup %2722 }
 0x35b   : > { %v1309_v48 = vsel %vm1057_vm10, %v3282_v47, 0.0 }
 0x35c   : > { %1310 = vadd.xlane.f32.xlu2 %v1309_v48 }
 0x35d   : > { %v1182_v49 = vpop.xlane.xlu1 %1181 }
 0x35e   : > { %v1184_v50 = vsub.f32 %v1176_v14, %v1182_v49  ;;  %1342 = vrot.lane.b32.xlu0 %v3266_v31, %s2887_s23  ;;  %v1072_v51 = vpop.xlane.xlu0 %1071 }
 0x35f   : > { %2724 = vrcp.f32 %v1072_v51 }
 0x360   : > { %v1187_v52 = vmul.f32 1.442695, %v1184_v50 }
 0x362   : > { %2726 = vpow2.f32 %v1187_v52 }
 0x365   : > { %v2725_v53 = vpop.eup %2724  ;;  %v1413_v54 = vpop.xlane.xlu1 %1412 }
 0x366   : > { %v1078_v55 = vmul.f32 %v2725_v53, %v2717_v15  ;;  %v1417_v56 = vsub.f32 %v1409_v20, %v1413_v54 }
 0x368   : > { %v2727_v57 = vpop.eup %2726  ;;  %v1080_v13 = vpack.c.bf16 %v1078_v55, %v1078_v55  ;;  %v1419_v58 = vmul.f32 1.442695, %v1417_v56 }
 0x369   : > { %v1192_v59 = vsel %vm1057_vm10, %v2727_v57, 0.0 }
 0x36a   : > { %2728 = vpow2.f32 %v1419_v58  ;;  %1193 = vadd.xlane.f32.xlu2 %v1192_v59  ;;  %2374 = vmatmul.msk.bf16.vlgmr.msra.gmra.mxu3 %vm1057_vm10, %v1080_v13 }
 0x36e   : > { %v1075_v60 = vpop.xlane.xlu1 %1074 }
 0x36f   : > { %2730 = vrcp.f32 %v1075_v60 }
 0x370   : > { %v3290_v61 = vpop.eup %2728 }
 0x371   : > { %v1229_v62 = vpop.permute.xlu0 %1228  ;;  %v1423_v63 = vsel %vm1057_vm10, %v3290_v61, 0.0 }
 0x372   : > { %v1234_v0 = vsel %vm1085_vm8, %v1229_v62, 0  ;;  %1424 = vadd.xlane.f32.xlu1 %v1423_v63 }
 0x373   : > { %1243 = vmatpush.bf16.msra.mxu0 %v1234_v0 }
 0x375   : > { %v2731_v1 = vpop.eup %2730 }
 0x376   : > { %v1079_v4 = vmul.f32 %v2731_v1, %v2719_v28 }
 0x378   : > { %v1081_v5 = vpack.c.bf16 %v1079_v4, %v1079_v4 }
 0x37a   : > { %2375 = vmatmul.msk.bf16.vlgmr.msrb.gmra.mxu0 %vm1057_vm10, %v1081_v5 }
 0x37e   : > { %v1302_v6 = vpop.xlane.xlu2 %1301 }
 0x37f   : > { %v1304_v7 = vsub.f32 %v1296_v34, %v1302_v6 }
 0x381   : > { %v1307_v9 = vmul.f32 1.442695, %v1304_v7  ;;  %v2588_v7 = vld [vmem:[%s3047_s28 + $0x38] sm:$0xff] }
 0x382   : > { %1574 = vmatpush.bf16.msrb.mxu1 %v2588_v7  ;;  %v2446_v7 = vld [vmem:[%s3099_s13 + $0x30] sm:$0xf] }
 0x383   : > { %2732 = vpow2.f32 %v1307_v9  ;;  %v2587_v9 = vld [vmem:[%s3047_s28 + $0x30] sm:$0xff] }
 0x386   : > { %v1416_v11 = vpop.xlane.xlu2 %1415  ;;  %v1205_v12 = vpop.permute.xlu1 %1204  ;;  %1575 = vmatpush.bf16.msrb.mxu1 %v2587_v9  ;;  %v2596_v9 = vld [vmem:[%s3099_s13 + $0x34] sm:$0xf0] }
 0x387   : > { %v1418_v14 = vsub.f32 %v1410_v37, %v1416_v11  ;;  %v1210_v15 = vsel %vm1085_vm8, %v1205_v12, 0  ;;  %v2586_v11 = vld [vmem:[%s3047_s28 + $0x28] sm:$0xff]  ;;  %v2585_v12 = vld [vmem:[%s3047_s28 + $0x20] sm:$0xff] }
 0x388   : > { %1219 = vmatpush.bf16.msrb.mxu3 %v1210_v15  ;;  %v2583_v15 = vld [vmem:[%s3047_s28 + $0x10] sm:$0xff] }
 0x389   : > { %v2733_v18 = vpop.eup %2732  ;;  %v1421_v19 = vmul.f32 1.442695, %v1418_v14  ;;  %v2584_v14 = vld [vmem:[%s3047_s28 + $0x18] sm:$0xff] }
 0x38a   : > { %v1312_v20 = vsel %vm1057_vm10, %v2733_v18, 0.0  ;;  %1576 = vmatpush.bf16.msrb.mxu1 %v2586_v11  ;;  %v2595_v11 = vld [vmem:[%s3099_s13 + $0x34] sm:$0xf] }
 0x38b   : > { %2734 = vpow2.f32 %v1421_v19  ;;  %1313 = vadd.xlane.f32.xlu2 %v1312_v20 }
 0x38c   : > { %1336 = vmatpush.bf16.msra.mxu3 %v1327_v16  ;;  %v2582_v16 = vld [vmem:[%s3047_s28 + $0x8] sm:$0xff] }
 0x38e   : > { %1577 = vmatpush.bf16.msrb.mxu1 %v2585_v12  ;;  %v2447_v12 = vor.u32 %v2596_v9, %v2446_v7  ;;  %v2608_v7 = vld [vmem:[%s3053_s14 + $0x18] sm:$0xff] }
 0x38f   : > { %v2616_v9 = vld [vmem:[%s3053_s14 + $0x58] sm:$0xff] }
 0x391   : > { %v2735_v21 = vpop.eup %2734 }
 0x392   : > { %v1426_v22 = vsel %vm1057_vm10, %v2735_v21, 0.0  ;;  %1578 = vmatpush.bf16.msrb.mxu1 %v2584_v14  ;;  %v2448_v14 = vld [vmem:[%s3099_s13 + $0x38] sm:$0xf0] }
 0x393   : > { %1427 = vadd.xlane.f32.xlu0 %v1426_v22 }
 0x396   : > { %1579 = vmatpush.bf16.msrb.mxu1 %v2583_v15  ;;  %v2451_v15 = vor.u32 %v2595_v11, %v2448_v14  ;;  %v2607_v11 = vld [vmem:[%s3053_s14 + $0x10] sm:$0xff] }
 0x397   : > { %v1665_v14 = vld [vmem:[%s3105_s15] sm:$0x3] }
 0x39a   : > { %1580 = vmatpush.bf16.msrb.mxu1 %v2582_v16  ;;  %v2438_v16 = vld [vmem:[%s3099_s13 + $0x20] sm:$0xf] }
 0x3a3   : > { %1435 = vrot.lane.b32.xlu2 %v3253_v8, %s2886_s11 }
 0x3ab   : > { %1456 = vrot.lane.b32.xlu2 %v3266_v31, %s2886_s11 }
 0x3bd   : > { %v1191_v23 = vpop.xlane.xlu0 %1190 }
 0x3be   : > { %2736 = vrcp.f32 %v1191_v23 }
 0x3c4   : > { %v2737_v24 = vpop.eup %2736 }
 0x3c5   : > { %v1197_v25 = vmul.f32 %v2737_v24, %v3278_v42 }
 0x3c7   : > { %v1199_v26 = vpack.c.bf16 %v1197_v25, %v1197_v25 }
 0x3c9   : > { %2378 = vmatmul.msk.bf16.vlgmr.msrb.gmra.mxu3 %vm1057_vm10, %v1199_v26 }
 0x3cf   : > { %v1311_v27 = vpop.xlane.xlu2 %1310 }
 0x3d0   : > { %2738 = vrcp.f32 %v1311_v27  ;;  %v1343_v28 = vpop.permute.xlu0 %1342 }
 0x3d1   : > { %v1348_v29 = vsel %vm1085_vm8, %v1343_v28, 0 }
 0x3d2   : > { %1357 = vmatpush.bf16.msrb.mxu0 %v1348_v29 }
 0x3d6   : > { %v2739_v30 = vpop.eup %2738 }
 0x3d7   : > { %v1317_v8 = vmul.f32 %v2739_v30, %v3282_v47 }
 0x3d9   : > { %v1319_v33 = vpack.c.bf16 %v1317_v8, %v1317_v8 }
 0x3db   : > { %2382 = vmatmul.msk.bf16.vlgmr.msra.gmra.mxu3 %vm1057_vm10, %v1319_v33 }
 0x3dd   : > { %v1194_v31 = vpop.xlane.xlu2 %1193 }
 0x3de   : > { %2740 = vrcp.f32 %v1194_v31 }
 0x3e4   : > { %v2741_v34 = vpop.eup %2740 }
 0x3e5   : > { %v1198_v35 = vmul.f32 %v2741_v34, %v2727_v57  ;;  %v1425_v39 = vpop.xlane.xlu1 %1424 }
 0x3e6   : > { %2742 = vrcp.f32 %v1425_v39 }
 0x3e7   : > { %v1200_v36 = vpack.c.bf16 %v1198_v35, %v1198_v35  ;;  %v2706_v35 = vld [vmem:[%s3506_s24] ss:$0 sm:$0xff] }
 0x3e9   : > { %2379 = vmatmul.msk.bf16.vlgmr.msra.gmra.mxu0 %vm1057_vm10, %v1200_v36 }
 0x3ec   : > { %v2743_v42 = vpop.eup %2742 }
 0x3ed   : > { %v3310_v37 = vpop.f32.mrf.mxu3  ;;  %v1431_v44 = vmul.f32 %v2743_v42, %v3290_v61 }
 0x3ef   : > { %v1433_v50 = vpack.c.bf16 %v1431_v44, %v1431_v44 }
 0x3f5   : > { %v1100_v32 = vpop.f32.mrf.mxu3 }
 0x3f7   : > { %v3312_v38 = vpop.f32.mrf.mxu0 }
 0x3fe   : > { %v1314_v40 = vpop.xlane.xlu2 %1313 }
 0x3ff   : > { %2744 = vrcp.f32 %v1314_v40  ;;  %v1119_v41 = vpop.f32.mrf.mxu0 }
 0x405   : > { %v2745_v43 = vpop.eup %2744 }
 0x406   : > { %v1318_v45 = vmul.f32 %v2745_v43, %v2733_v18  ;;  %v1436_v46 = vpop.permute.xlu2 %1435  ;;  %v1428_v49 = vpop.xlane.xlu0 %1427  ;;  %v2581_v18 = vld [vmem:[%s3047_s28] sm:$0xff] }
 0x407   : > { %v1441_v47 = vsel %vm1085_vm8, %v1436_v46, 0  ;;  %2746 = vrcp.f32 %v1428_v49  ;;  %1581 = vmatpush.bf16.msrb.mxu1 %v2581_v18  ;;  %v2603_v49 = vld [vmem:[%s3099_s13 + $0x74] sm:$0xf]  ;;  %v2594_v18 = vld [vmem:[%s3099_s13 + $0x24] sm:$0xf0] }
 0x408   : > { %v1320_v48 = vpack.c.bf16 %v1318_v45, %v1318_v45  ;;  %1450 = vmatpush.bf16.msrb.mxu3 %v1441_v47  ;;  %v2478_v47 = vld [vmem:[%s3099_s13 + $0x70] sm:$0xf] }
 0x40a   : > { %2383 = vmatmul.msk.bf16.vlgmr.msrb.gmra.mxu0 %vm1057_vm10, %v1320_v48  ;;  %v2604_v48 = vld [vmem:[%s3099_s13 + $0x74] sm:$0xf0] }
 0x40b   : > { %2386 = vmatmul.msk.bf16.vlgmr.msrb.gmra.mxu3 %vm1057_vm10, %v1433_v50  ;;  %v2479_v50 = vor.u32 %v2604_v48, %v2478_v47 }
 0x40d   : > { %v2747_v53 = vpop.eup %2746  ;;  %1751 = vmatpush.bf16.msrb.mxu2 %v2479_v50 }
 0x40e   : > { %v1457_v51 = vpop.permute.xlu2 %1456  ;;  %v1432_v54 = vmul.f32 %v2747_v53, %v2735_v21  ;;  %v2470_v53 = vld [vmem:[%s3099_s13 + $0x60] sm:$0xf] }
 0x40f   : > { %v1462_v52 = vsel %vm1085_vm8, %v1457_v51, 0  ;;  %v2480_v51 = vld [vmem:[%s3099_s13 + $0x78] sm:$0xf0] }
 0x410   : > { %1471 = vmatpush.bf16.msra.mxu0 %v1462_v52  ;;  %v1434_v55 = vpack.c.bf16 %v1432_v54, %v1432_v54  ;;  %v2483_v52 = vor.u32 %v2603_v49, %v2480_v51  ;;  %v2602_v54 = vld [vmem:[%s3099_s13 + $0x64] sm:$0xf0] }
 0x412   : > { %1765 = vmatpush.bf16.msra.mxu3 %v2483_v52 }
 0x41a   : > { %2387 = vmatmul.msk.bf16.vlgmr.msra.gmra.mxu0 %vm1057_vm10, %v1434_v55  ;;  %v2601_v55 = vld [vmem:[%s3099_s13 + $0x64] sm:$0xf] }
 0x44c   : > { %v1221_v56 = vpop.f32.mrf.mxu3 }
 0x454   : > { %v1223_v57 = vpop.f32.mrf.mxu3 }
 0x455   : > { %v2472_v57 = vld [vmem:[%s3099_s13 + $0x68] sm:$0xf0] }
 0x45e   : > { %v1338_v13 = vpop.f32.mrf.mxu3 }
 0x466   : > { %v1245_v58 = vpop.f32.mrf.mxu0  ;;  %v1340_v59 = vpop.f32.mrf.mxu3 }
 0x467   : > { %v2689_v60 = vpack.i.bf16 %v1245_v58, %v1221_v56  ;;  %v2471_v56 = vor.u32 %v2602_v54, %v2470_v53  ;;  %v2462_v58 = vld [vmem:[%s3099_s13 + $0x50] sm:$0xf]  ;;  %v2600_v59 = vld [vmem:[%s3099_s13 + $0x54] sm:$0xf0] }
 0x469   : > { %2690 = vrot.lane.b32.xlu2 %v2689_v60, %s2886_s11  ;;  %1752 = vmatpush.bf16.msrb.mxu2 %v2471_v56  ;;  %v2599_v60 = vld [vmem:[%s3099_s13 + $0x54] sm:$0xf] }
 0x46e   : > { %v1247_v61 = vpop.f32.mrf.mxu0 }
 0x46f   : > { %v2463_v61 = vor.u32 %v2600_v59, %v2462_v58 }
 0x471   : > { %1753 = vmatpush.bf16.msrb.mxu2 %v2463_v61 }
 0x487   : > { %v1359_v62 = vpop.f32.mrf.mxu0 }
 0x488   : > { %v2694_v63 = vpack.i.bf16 %v1359_v62, %v1338_v13  ;;  %v2475_v13 = vor.u32 %v2601_v55, %v2472_v57  ;;  %v2464_v62 = vld [vmem:[%s3099_s13 + $0x58] sm:$0xf0]  ;;  %v2707_v55 = vld [vmem:[%s3507_s17] ss:$0 sm:$0xff] }
 0x48a   : > { %2695 = vrot.lane.b32.xlu1 %v2694_v63, %s2887_s23  ;;  %1766 = vmatpush.bf16.msra.mxu3 %v2475_v13  ;;  %v2467_v63 = vor.u32 %v2599_v60, %v2464_v62 }
 0x48e   : > { %v1452_v0 = vpop.f32.mrf.mxu3  ;;  %1767 = vmatpush.bf16.msra.mxu3 %v2467_v63  ;;  %v2612_v63 = vld [vmem:[%s3053_s14 + $0x38] sm:$0xff] }
 0x48f   : > { %v1361_v1 = vpop.f32.mrf.mxu0  ;;  %1949 = vmatpush.bf16.msrb.mxu0 %v2612_v63 }
 0x490   : > { %v2598_v1 = vld [vmem:[%s3099_s13 + $0x44] sm:$0xf0] }
 0x496   : > { %v1454_v17 = vpop.f32.mrf.mxu3 }
 0x497   : > { %v1473_v4 = vpop.f32.mrf.mxu0  ;;  %v2597_v17 = vld [vmem:[%s3099_s13 + $0x44] sm:$0xf] }
 0x498   : > { %v2699_v5 = vpack.i.bf16 %v1473_v4, %v1452_v0  ;;  %v2454_v0 = vld [vmem:[%s3099_s13 + $0x40] sm:$0xf] }
 0x499   : > { %v2455_v4 = vor.u32 %v2598_v1, %v2454_v0  ;;  %v2620_v0 = vld [vmem:[%s3053_s14 + $0x78] sm:$0xff]  ;;  %v2619_v1 = vld [vmem:[%s3053_s14 + $0x70] sm:$0xff] }
 0x49a   : > { %2700 = vrot.lane.b32.xlu2 %v2699_v5, %s2885_s22  ;;  %v2456_v5 = vld [vmem:[%s3099_s13 + $0x48] sm:$0xf0]  ;;  %1963 = vmatpush.bf16.msra.mxu1 %v2620_v0 }
 0x49b   : > { %1754 = vmatpush.bf16.msrb.mxu2 %v2455_v4  ;;  %v2618_v4 = vld [vmem:[%s3053_s14 + $0x68] sm:$0xff] }
 0x49e   : > { %1964 = vmatpush.bf16.msra.mxu1 %v2619_v1 }
 0x49f   : > { %v1475_v6 = vpop.f32.mrf.mxu0  ;;  %1755 = vmatpush.bf16.msrb.mxu2 %v2447_v12  ;;  %v2615_v12 = vld [vmem:[%s3053_s14 + $0x50] sm:$0xff] }
 0x4a0   : > { %v2459_v6 = vor.u32 %v2597_v17, %v2456_v5  ;;  %v2610_v17 = vld [vmem:[%s3053_s14 + $0x28] sm:$0xff]  ;;  %v2609_v5 = vld [vmem:[%s3053_s14 + $0x20] sm:$0xff] }
 0x4a2   : > { %1768 = vmatpush.bf16.msra.mxu3 %v2459_v6  ;;  %1965 = vmatpush.bf16.msra.mxu1 %v2618_v4  ;;  %v2617_v6 = vld [vmem:[%s3053_s14 + $0x60] sm:$0xff] }
 0x4a6   : > { %1769 = vmatpush.bf16.msra.mxu3 %v2451_v15  ;;  %1966 = vmatpush.bf16.msra.mxu1 %v2617_v6  ;;  %v2606_v15 = vld [vmem:[%s3053_s14 + $0x8] sm:$0xff] }
 0x4aa   : > { %1967 = vmatpush.bf16.msra.mxu1 %v2616_v9 }
 0x4ae   : > { %1968 = vmatpush.bf16.msra.mxu1 %v2615_v12 }
 0x4c3   : > { %v2691_v19 = vpop.permute.xlu2 %2690 }
 0x4c4   : > { %v2693_v20 = vunpack.i.h.bf16 %v2691_v19  ;;  %v2692_v21 = vunpack.i.l.bf16 %v2691_v19  ;;  %v2593_v19 = vld [vmem:[%s3099_s13 + $0x24] sm:$0xf] }
 0x4c6   : > { %v1502_v26 = vsel %vm1014_vm7, %v3312_v38, %v2693_v20  ;;  %v1501_v27 = vsel %vm1014_vm7, %v3310_v37, %v2692_v21  ;;  %v2439_v20 = vor.u32 %v2594_v18, %v2438_v16  ;;  %v2440_v21 = vld [vmem:[%s3099_s13 + $0x28] sm:$0xf0]  ;;  %v2614_v16 = vld [vmem:[%s3053_s14 + $0x48] sm:$0xff]  ;;  %v1667_v18 = vperm.slane %v1665_v14, 0 }
 0x4c7   : > { %1969 = vmatpush.bf16.msra.mxu1 %v2614_v16 }
 0x4c8   : > { %1756 = vmatpush.bf16.msrb.mxu2 %v2439_v20 }
 0x4f4   : > { %v2701_v22 = vpop.permute.xlu2 %2700 }
 0x4f5   : > { %v2703_v28 = vunpack.i.h.bf16 %v2701_v22  ;;  %v2702_v29 = vunpack.i.l.bf16 %v2701_v22  ;;  %v2443_v22 = vor.u32 %v2593_v19, %v2440_v21  ;;  %v1668_v19 = vperm.slane %v1665_v14, 1 }
 0x4f7   : > { %1770 = vmatpush.bf16.msra.mxu3 %v2443_v22  ;;  %v2605_v22 = vld [vmem:[%s3053_s14] sm:$0xff] }
 0x4fc   : > { %v2696_v23 = vpop.permute.xlu1 %2695 }
 0x4fd   : > { %v2698_v24 = vunpack.i.h.bf16 %v2696_v23  ;;  %v2697_v25 = vunpack.i.l.bf16 %v2696_v23  ;;  %v2430_v23 = vld [vmem:[%s3099_s13 + $0x10] sm:$0xf] }
 0x4ff   : > { %v1505_v30 = vsel %vm1503_vm11, %v1502_v26, %v2698_v24  ;;  %v1504_v8 = vsel %vm1503_vm11, %v1501_v27, %v2697_v25  ;;  %v2592_v24 = vld [vmem:[%s3099_s13 + $0x14] sm:$0xf0]  ;;  %v2591_v25 = vld [vmem:[%s3099_s13 + $0x14] sm:$0xf]  ;;  %v2432_v27 = vld [vmem:[%s3099_s13 + $0x18] sm:$0xf0] }
 0x500   : > { %v1507_v33 = vsel %vm1506_vm12, %v1504_v8, %v2702_v29  ;;  %v1508_v31 = vsel %vm1506_vm12, %v1505_v30, %v2703_v28  ;;  %v2431_v26 = vor.u32 %v2592_v24, %v2430_v23  ;;  %v2422_v28 = vld [vmem:[%s3099_s13] sm:$0xf]  ;;  %v2590_v29 = vld [vmem:[%s3099_s13 + $0x4] sm:$0xf0]  ;;  %v2435_v8 = vor.u32 %v2591_v25, %v2432_v27  ;;  %v2613_v23 = vld [vmem:[%s3053_s14 + $0x40] sm:$0xff] }
 0x501   : > { %v1509_v34 = vpack.c.bf16 %v1508_v31, %v1507_v33  ;;  %v2589_v33 = vld [vmem:[%s3099_s13 + $0x4] sm:$0xf]  ;;  %v2424_v31 = vld [vmem:[%s3099_s13 + $0x8] sm:$0xf0]  ;;  %1970 = vmatpush.bf16.msra.mxu1 %v2613_v23 }
 0x502   : > { %1757 = vmatpush.bf16.msrb.mxu2 %v2431_v26  ;;  %1771 = vmatpush.bf16.msra.mxu3 %v2435_v8 }
 0x503   : > { %1582 = vmatmul.bf16.vlgmr.msrb.gmra.mxu1 %v1509_v34 }
 0x580   : > { %v1583_v36 = vpop.f32.mrf.mxu1 }
 0x581   : > { %v1588_v32 = vadd.f32 %v1583_v36, %v3118_v2  ;;  %v2427_v36 = vor.u32 %v2589_v33, %v2424_v31 }
 0x583   : > { %v3341_v38 = vadd.f32 %v2706_v35, %v1588_v32  ;;  %1772 = vmatpush.bf16.msra.mxu3 %v2427_v36 }
 0x585   : > { %1598 = vadd.xlane.f32.xlu0 %v3341_v38 }
 0x588   : > { %v1585_v37 = vpop.f32.mrf.mxu1 }
 0x589   : > { %v1589_v39 = vadd.f32 %v1585_v37, %v3121_v3 }
 0x58b   : > { %v3345_v40 = vadd.f32 %v2706_v35, %v1589_v39  ;;  %v2423_v35 = vor.u32 %v2590_v29, %v2422_v28 }
 0x58d   : > { %1600 = vadd.xlane.f32.xlu2 %v3345_v40  ;;  %1758 = vmatpush.bf16.msrb.mxu2 %v2423_v35 }
 0x5f8   : > { %v1599_v41 = vpop.xlane.xlu0 %1598 }
 0x5f9   : > { %v1602_v42 = vmul.f32 %v1599_v41, %v3124_v10 }
 0x5fb   : > { %v3350_v2 = vsub.f32 %v3341_v38, %v1602_v42 }
 0x5fd   : > { %v1606_v43 = vmul.f32 %v3350_v2, %v3350_v2 }
 0x5ff   : > { %1608 = vadd.xlane.f32.xlu0 %v1606_v43 }
 0x600   : > { %v1601_v44 = vpop.xlane.xlu2 %1600 }
 0x601   : > { %v1603_v3 = vmul.f32 %v1601_v44, %v3124_v10 }
 0x603   : > { %v3356_v45 = vsub.f32 %v3345_v40, %v1603_v3 }
 0x605   : > { %v1607_v46 = vmul.f32 %v3356_v45, %v3356_v45 }
 0x607   : > { %1610 = vadd.xlane.f32.xlu0 %v1607_v46 }
 0x672   : > { %v1609_v30 = vpop.xlane.xlu0 %1608 }
 0x673   : > { %v1612_v34 = vmul.f32 %v1609_v30, %v3124_v10 }
 0x675   : > { %v1614_v32 = vadd.f32 1e-12, %v1612_v34 }
 0x677   : > { %2748 = vrsqrt.f32 %v1614_v32  ;;  %vm1622_vm14 = vweird.f32 %v1614_v32 }
 0x67a   : > { %v1611_v37 = vpop.xlane.xlu0 %1610 }
 0x67b   : > { %v1613_v39 = vmul.f32 %v1611_v37, %v3124_v10 }
 0x67d   : > { %v2749_v41 = vpop.eup %2748  ;;  %v1615_v42 = vadd.f32 1e-12, %v1613_v39 }
 0x67e   : > { %v1617_v43 = vmul.f32 %v2749_v41, %v1614_v32  ;;  %vm1623_vm13 = vweird.f32 %v2749_v41 }
 0x67f   : > { %2750 = vrsqrt.f32 %v1615_v42  ;;  %vm1624_vm15 = vmor %vm1622_vm14, %vm1623_vm13  ;;  %vm1632_vm1 = vweird.f32 %v1615_v42 }
 0x680   : > { %v1618_v44 = vmul.f32 %v2749_v41, %v1617_v43 }
 0x682   : > { %v1619_v3 = vmul.f32 0.5, %v1618_v44 }
 0x684   : > { %v1620_v46 = vsub.f32 1.5, %v1619_v3 }
 0x685   : > { %v2751_v47 = vpop.eup %2750 }
 0x686   : > { %v1621_v48 = vmul.f32 %v2749_v41, %v1620_v46  ;;  %v1627_v49 = vmul.f32 %v2751_v47, %v1615_v42  ;;  %vm1633_vm0 = vweird.f32 %v2751_v47 }
 0x687   : > { %vm1634_vm2 = vmor %vm1632_vm1, %vm1633_vm0 }
 0x688   : > { %v1628_v50 = vmul.f32 %v2751_v47, %v1627_v49  ;;  %v1625_v51 = vsel %vm1624_vm15, %v2749_v41, %v1621_v48 }
 0x689   : > { %v1636_v54 = vmul.f32 %v1625_v51, %v3350_v2  ;;  %v2708_v2 = vld [vmem:[%s3508_s18] ss:$0 sm:$0xff] }
 0x68a   : > { %v1629_v52 = vmul.f32 0.5, %v1628_v50 }
 0x68b   : > { %v1641_v58 = vmul.f32 %v2707_v55, %v1636_v54 }
 0x68c   : > { %v1630_v53 = vsub.f32 1.5, %v1629_v52 }
 0x68d   : > { %v1646_v60 = vadd.f32 %v2708_v2, %v1641_v58 }
 0x68e   : > { %v1631_v56 = vmul.f32 %v2751_v47, %v1630_v53 }
 0x690   : > { %v1635_v57 = vsel %vm1634_vm2, %v2751_v47, %v1631_v56 }
 0x691   : > { %v1637_v13 = vmul.f32 %v1635_v57, %v3356_v45  ;;  %v2611_v45 = vld [vmem:[%s3053_s14 + $0x30] sm:$0xff] }
 0x692   : > { %1950 = vmatpush.bf16.msrb.mxu0 %v2611_v45 }
 0x693   : > { %v1642_v59 = vmul.f32 %v2707_v55, %v1637_v13 }
 0x695   : > { %v1647_v61 = vadd.f32 %v2708_v2, %v1642_v59 }
 0x696   : > { %1951 = vmatpush.bf16.msrb.mxu0 %v2610_v17  ;;  %v2709_v17 = vld [vmem:[%s696_s29] ss:$0 sm:$0xff] }
 0x697   : > { %v1648_v62 = vpack.c.bf16 %v1647_v61, %v1646_v60 }
 0x699   : > { %1759 = vmatmul.bf16.vlgmr.msrb.gmra.mxu2 %v1648_v62  ;;  %1773 = vmatmul.bf16.vlgmr.msra.gmra.mxu3 %v1648_v62 }
 0x69a   : > { %1952 = vmatpush.bf16.msrb.mxu0 %v2609_v5 }
 0x69e   : > { %1953 = vmatpush.bf16.msrb.mxu0 %v2608_v7 }
 0x6a2   : > { %1954 = vmatpush.bf16.msrb.mxu0 %v2607_v11 }
 0x6a6   : > { %1955 = vmatpush.bf16.msrb.mxu0 %v2606_v15 }
 0x6aa   : > { %1956 = vmatpush.bf16.msrb.mxu0 %v2605_v22 }
 0x71c   : > { %v1760_v20 = vpop.f32.mrf.mxu2  ;;  %v1774_v21 = vpop.f32.mrf.mxu3 }
 0x71d   : > { %v1761_v24 = vadd.f32 %v1760_v20, %v1667_v18  ;;  %v1775_v25 = vadd.f32 %v1774_v21, %v1668_v19 }
 0x71f   : > { %v1779_v26 = vmul.f32 %v1761_v24, %v1761_v24  ;;  %v1780_v27 = vmul.f32 %v1775_v25, %v1775_v25 }
 0x721   : > { %v1783_v28 = vmul.f32 %v1779_v26, %v1761_v24  ;;  %v1784_v29 = vmul.f32 %v1780_v27, %v1775_v25 }
 0x723   : > { %v1787_v30 = vmul.f32 0.044715, %v1783_v28  ;;  %v1788_v8 = vmul.f32 0.044715, %v1784_v29 }
 0x724   : > { %v1762_v33 = vpop.f32.mrf.mxu2  ;;  %v1776_v31 = vpop.f32.mrf.mxu3 }
 0x725   : > { %v1791_v34 = vadd.f32 %v1787_v30, %v1761_v24  ;;  %v1792_v35 = vadd.f32 %v1788_v8, %v1775_v25  ;;  %v1763_v36 = vadd.f32 %v1762_v33, %v1667_v18  ;;  %v1777_v32 = vadd.f32 %v1776_v31, %v1668_v19 }
 0x727   : > { %v1795_v37 = vmul.f32 0.7978846, %v1791_v34  ;;  %v1781_v39 = vmul.f32 %v1763_v36, %v1763_v36  ;;  %v1782_v41 = vmul.f32 %v1777_v32, %v1777_v32  ;;  %v1796_v42 = vmul.f32 0.7978846, %v1792_v35 }
 0x729   : > { %v1785_v43 = vmul.f32 %v1781_v39, %v1763_v36  ;;  %v1786_v44 = vmul.f32 %v1782_v41, %v1777_v32  ;;  %2752 = vtanh.f32 %v1795_v37 }
 0x72a   : > { %2754 = vtanh.f32 %v1796_v42 }
 0x72b   : > { %v1789_v3 = vmul.f32 0.044715, %v1785_v43  ;;  %v1790_v46 = vmul.f32 0.044715, %v1786_v44 }
 0x72d   : > { %v1793_v47 = vadd.f32 %v1789_v3, %v1763_v36  ;;  %v1794_v48 = vadd.f32 %v1790_v46, %v1777_v32 }
 0x72f   : > { %v1797_v49 = vmul.f32 0.7978846, %v1793_v47  ;;  %v1798_v50 = vmul.f32 0.7978846, %v1794_v48  ;;  %v2753_v51 = vpop.eup %2752 }
 0x730   : > { %v2755_v52 = vpop.eup %2754  ;;  %v1803_v53 = vadd.f32 1.0, %v2753_v51 }
 0x731   : > { %2756 = vtanh.f32 %v1797_v49  ;;  %v1804_v54 = vadd.f32 1.0, %v2755_v52 }
 0x732   : > { %2758 = vtanh.f32 %v1798_v50  ;;  %v1807_v57 = vmul.f32 0.5, %v1803_v53 }
 0x733   : > { %v1808_v58 = vmul.f32 0.5, %v1804_v54 }
 0x734   : > { %v1811_v61 = vmul.f32 %v1807_v57, %v1761_v24 }
 0x735   : > { %v1812_v63 = vmul.f32 %v1808_v58, %v1775_v25 }
 0x737   : > { %v2757_v55 = vpop.eup %2756 }
 0x738   : > { %v2759_v56 = vpop.eup %2758  ;;  %v1805_v13 = vadd.f32 1.0, %v2757_v55 }
 0x739   : > { %v1806_v2 = vadd.f32 1.0, %v2759_v56 }
 0x73a   : > { %v1809_v59 = vmul.f32 0.5, %v1805_v13 }
 0x73b   : > { %v1810_v60 = vmul.f32 0.5, %v1806_v2 }
 0x73c   : > { %v1813_v62 = vmul.f32 %v1809_v59, %v1763_v36 }
 0x73d   : > { %v1814_v0 = vmul.f32 %v1810_v60, %v1777_v32 }
 0x73e   : > { %v1815_v45 = vpack.c.bf16 %v1813_v62, %v1811_v61 }
 0x73f   : > { %v1816_v1 = vpack.c.bf16 %v1814_v0, %v1812_v63 }
 0x740   : > { %1957 = vmatmul.bf16.vlgmr.msrb.gmra.mxu0 %v1815_v45 }
 0x741   : > { %1971 = vmatmul.bf16.vlgmr.msra.gmra.mxu1 %v1816_v1 }
 0x7bd   : > { %v1958_v4 = vpop.f32.mrf.mxu0 }
 0x7be   : > { %v1959_v5 = vadd.f32 %v2709_v17, %v1958_v4  ;;  %v1972_v6 = vpop.f32.mrf.mxu1 }
 0x7c0   : > { %v1973_v7 = vadd.f32 %v1972_v6, %v1959_v5 }
 0x7c2   : > { %v1977_v9 = vadd.f32 %v1973_v7, %v3341_v38 }
 0x7c5   : > { %v1960_v11 = vpop.f32.mrf.mxu0 }
 0x7c6   : > { %v1961_v12 = vadd.f32 %v2709_v17, %v1960_v11  ;;  %v1974_v14 = vpop.f32.mrf.mxu1  ;;  %1982 = sbr.rel (%p2548_p1) target bundleno = 1997 (0x7cd), region = 111 }
 0x7c8   : > { %v1975_v15 = vadd.f32 %v1974_v14, %v1961_v12 }
 0x7ca   : > { %v1978_v16 = vadd.f32 %v1975_v15, %v3345_v40 }
 0x7cb   : > { %1983 = vst [vmem:[#allocation2] sm:$0xff] %v1977_v9 }
 0x7cc   : > { %1984 = vst [vmem:[#allocation2 + $0x8] sm:$0xff] %v1978_v16 }
 0x7cd PF: > { %p2549_p2 = scmp.ne.s32.totalorder %s2872_s21, 1 }
 0x7ce   : > { %s3510_s29 = sld [smem:[#allocation21_spill]] (!%p2549_p2) }
 0x7cf   : > { %1988 = sbr.rel (%p2549_p2) target bundleno = 2286 (0x8ee), region = 115  ;;  %s3511_s22 = sld [smem:[#allocation22_spill]] (!%p2549_p2) }
 0x7d0   : > { %s3512_s28 = sld [smem:[#allocation23_spill]] (!%p2549_p2) }
 0x7d4   : > { %v1993_v18 = vrot.slane %v1978_v16, 7  ;;  %vm1994_vm3 = vcmask 1041409   ;;  %vm1997_vm4 = vcmask 1041408   ;;  %v2760_v42 = vld [vmem:[%s3510_s29] ss:$0 sm:$0xff] }
 0x7d5   : > { %v2761_v3 = vld [vmem:[%s3511_s22] ss:$0 sm:$0xff] }
 0x7d6   : > { %v1995_v38 = vsel %vm1994_vm3, %v1993_v18, %v1977_v9 }
 0x7d7   : > { %v1998_v19 = vsel %vm1997_vm4, %v1995_v38, 0.0 }
 0x7d8   : > { %1999 = vadd.xlane.f32.xlu0 %v1998_v19 }
 0x84b   : > { %v2000_v20 = vpop.xlane.xlu0 %1999 }
 0x84c   : > { %v2001_v21 = vmul.f32 %v2000_v20, %v3124_v10 }
 0x84e   : > { %v2003_v40 = vrot.slane %v2001_v21, 1  ;;  %v2006_v22 = vsub.f32 %v1977_v9, %v2001_v21 }
 0x850   : > { %v2007_v23 = vsub.f32 %v1978_v16, %v2003_v40  ;;  %v2008_v25 = vmul.f32 %v2006_v22, %v2006_v22 }
 0x852   : > { %v2009_v24 = vmul.f32 %v2007_v23, %v2007_v23 }
 0x854   : > { %v2012_v26 = vrot.slane %v2009_v24, 7 }
 0x856   : > { %v2013_v27 = vsel %vm1994_vm3, %v2012_v26, %v2008_v25 }
 0x857   : > { %v2015_v28 = vsel %vm1997_vm4, %v2013_v27, 0.0 }
 0x858   : > { %2016 = vadd.xlane.f32.xlu0 %v2015_v28 }
 0x8cb   : > { %v2017_v29 = vpop.xlane.xlu0 %2016 }
 0x8cc   : > { %v2018_v30 = vmul.f32 %v2017_v29, %v3124_v10 }
 0x8ce   : > { %v2019_v8 = vadd.f32 1e-12, %v2018_v30 }
 0x8d0   : > { %2762 = vrsqrt.f32 %v2019_v8  ;;  %vm2026_vm6 = vweird.f32 %v2019_v8 }
 0x8d6   : > { %v2763_v33 = vpop.eup %2762 }
 0x8d7   : > { %v2021_v31 = vmul.f32 %v2763_v33, %v2019_v8  ;;  %vm2027_vm5 = vweird.f32 %v2763_v33 }
 0x8d8   : > { %vm2028_vm7 = vmor %vm2026_vm6, %vm2027_vm5 }
 0x8d9   : > { %v2022_v34 = vmul.f32 %v2763_v33, %v2021_v31 }
 0x8db   : > { %v2023_v35 = vmul.f32 0.5, %v2022_v34 }
 0x8dd   : > { %v2024_v36 = vsub.f32 1.5, %v2023_v35 }
 0x8df   : > { %v2025_v32 = vmul.f32 %v2763_v33, %v2024_v36 }
 0x8e1   : > { %v2029_v37 = vsel %vm2028_vm7, %v2763_v33, %v2025_v32 }
 0x8e2   : > { %v2031_v39 = vrot.slane %v2029_v37, 1  ;;  %v2034_v41 = vmul.f32 %v2029_v37, %v2006_v22 }
 0x8e4   : > { %v2035_v43 = vmul.f32 %v2031_v39, %v2007_v23  ;;  %v2039_v10 = vmul.f32 %v2760_v42, %v2034_v41 }
 0x8e6   : > { %v2040_v44 = vmul.f32 %v2760_v42, %v2035_v43  ;;  %v2044_v47 = vadd.f32 %v2761_v3, %v2039_v10 }
 0x8e8   : > { %v2045_v46 = vadd.f32 %v2761_v3, %v2040_v44 }
 0x8ea   : > { %v2048_v48 = vrot.slane %v2045_v46, 7 }
 0x8ec   : > { %v2049_v49 = vsel %vm1994_vm3, %v2048_v48, %v2044_v47 }
 0x8ed   : > { %2051 = vst [vmem:[%s3512_s28] sm:$0x3] %v2049_v49 }
 0x8ee PF: > { %s3513_s26 = sld [smem:[#allocation14_spill]]  ;;  %s3518_s18 = smov %s2864_s19 }
 0x8ef   : > { %s3514_s24 = sld [smem:[#allocation12_spill]] }
 0x8f0   : > { %s3515_s20 = sld [smem:[#allocation16_spill]] }
 0x8f1   : > { %s3516_s21 = sld [smem:[#allocation13_spill]] }
 0x8f2   : > { %s3517_s22 = sld [smem:[#allocation15_spill]] }
 0x8f4   : > { %s31_s23 = sadd.s32 1, %s3513_s26  }
 0x8f5   : > { %p28_p3 = scmp.ge.s32.totalorder %s31_s23, 4   ;;  %s3519_s19 = smov %s3514_s24 }
 0x8f7   :  { %30 = sbr.rel (!%p28_p3) target bundleno = 14 (0xe), region = 195 }
 0x8fc   :  { %2071 = vsyncpa [#allocation5], 1 }
 0x8fd   :  { %2073 = vsyncpa [#allocation5 + $0x1], 1 }
 0x8fe   :  { %2074 = vsyncpa [#allocation7], 1 }
 0x8ff   :  { %2076 = vsyncpa [#allocation7 + $0x1], 1 }
 0x900   :  { %2077 = vsyncmov [#allocation3] }
 0x903   :  { %s2078_s13 = vpop.sfrf %2077 }
 0x904   :  { %p2553_p4 = scmp.ne.s32.totalorder %s2078_s13, 0 }
 0x906   :  { %2082 = shalt.err (%p2553_p4)  }

</bundles_post_ra>
